<compile_context>
chip_gen: v7x
topology: tpu7x:2x2x1
jax: 0.10.0
libtpu: 0.0.40
codegen_flags: <defaults>
</compile_context>

<pallas_src>
import math
from functools import partial

import jax
import jax.numpy as jnp
from jax.experimental import pallas as pl
from jax.experimental.pallas import tpu as pltpu

_DEFAULT_PAIRS_PER_BLOCK = 64  # 64 pairs * 2 streams * batch 8 -> M = 1024 rows


def _round_up(x, m):
    return ((x + m - 1) // m) * m


def _make_ddml_kernel(num_layers, half_rows):
    """Fused forward kernel for one block of packed pairs.

    Ref layout per grid step:
      refs[0]                     : x    -- (2*half_rows, D0); rows [0:half) are
                                            all feature1 batches of the block,
                                            rows [half:2*half) all feature2.
      refs[1]                     : seg  -- (Pblk, half_rows) 0/1 segment matrix
      refs[2 + 2m], refs[3 + 2m]  : W_m (in_m, out_m) [pre-transposed], b_m (1, out_m)
      refs[-1]                    : out  -- (Pblk, 1) per-pair squared distances
    """

    def kernel(*refs):
        x_ref, seg_ref = refs[0], refs[1]
        out_ref = refs[-1]

        h = x_ref[...]                                  # (2*half_rows, D0) f32
        for m in range(num_layers):
            w = refs[2 + 2 * m][...]                    # (in_m, out_m)
            b = refs[3 + 2 * m][...]                    # (1, out_m) broadcast
            z = jnp.dot(h, w, preferred_element_type=jnp.float32)
            h = jnp.tanh(z + b)

        # Per-pair ||f(x2) - f(x1)||^2 for all Pblk pairs in the block.
        d = h[half_rows:, :] - h[:half_rows, :]          # (half_rows, D_last)
        per_row = jnp.sum(d * d, axis=-1, keepdims=True)  # (half_rows, 1)
        # Segmented sublane reduction via one tiny matvec: (Pblk, half) @ (half, 1).
        out_ref[...] = jnp.dot(seg_ref[...], per_row,
                               preferred_element_type=jnp.float32)

    return kernel


def _ddml_forward_pairs_impl(features1, features2, weights, biases,
                             pairs_per_block):
    """features1/features2: (P, B, D0). Returns (P,) squared distances."""
    p, batch, d0 = features1.shape
    num_layers = len(weights)

    # Pad batch to a sublane multiple and pick a pair-block size.  Padded rows
    # are identical (zero) in both streams so they contribute 0 to the distance.
    b_pad = _round_up(batch, 8)
    pblk = min(_round_up(pairs_per_block, 8), _round_up(p, 8))
    num_blocks = pl.cdiv(p, pblk)
    p_pad = num_blocks * pblk
    half_rows = pblk * b_pad

    def pack(f):
        f = jnp.pad(f.astype(jnp.float32),
                    ((0, p_pad - p), (0, b_pad - batch), (0, 0)))
        return f.reshape(num_blocks, half_rows, d0)

    # One-time concat in the wrapper (XLA), not inside the kernel.
    x_cat = jnp.concatenate([pack(features1), pack(features2)], axis=1)

    # Segment matrix: seg[q, r] = 1 if row r belongs to pair q of the block.
    pair_idx = jnp.arange(pblk, dtype=jnp.int32)[:, None]
    row_idx = jnp.arange(half_rows, dtype=jnp.int32)[None, :]
    seg = (row_idx // b_pad == pair_idx).astype(jnp.float32)  # (pblk, half_rows)

    args = [x_cat, seg]
    in_specs = [
        pl.BlockSpec((None, 2 * half_rows, d0), lambda g: (g, 0, 0)),
        # Constant index map -> resident in VMEM, no re-DMA across grid steps.
        pl.BlockSpec((pblk, half_rows), lambda g: (0, 0)),
    ]
    for w, b in zip(weights, biases):
        out_d, in_d = w.shape
        args.append(jnp.asarray(w, jnp.float32).T)               # (in, out) once
        args.append(jnp.reshape(jnp.asarray(b, jnp.float32), (1, out_d)))
        in_specs.append(pl.BlockSpec((in_d, out_d), lambda g: (0, 0)))
        in_specs.append(pl.BlockSpec((1, out_d), lambda g: (0, 0)))

    kernel = _make_ddml_kernel(num_layers, half_rows)
    out = pl.pallas_call(
        kernel,
        out_shape=jax.ShapeDtypeStruct((num_blocks, pblk, 1), jnp.float32),
        grid=(num_blocks,),
        in_specs=in_specs,
        out_specs=pl.BlockSpec((None, pblk, 1), lambda g: (g, 0, 0)),
        compiler_params=pltpu.CompilerParams(
            dimension_semantics=("parallel",),  # shard pair-blocks on v7x cores
        ),
    )(*args)
    return out.reshape(p_pad)[:p]


@partial(jax.jit, static_argnames=("pairs_per_block",))
def ddml_forward_pairs(features1, features2, weights, biases, *,
                       pairs_per_block=_DEFAULT_PAIRS_PER_BLOCK):
    """Batched pairs: (P, B, D0) x 2 -> (P,) squared distances, one pallas_call."""
    return _ddml_forward_pairs_impl(features1, features2, weights, biases,
                                    pairs_per_block)


@jax.jit
def ddml_forward(feature1, feature2, weights, biases):
    """Single pair, exactly DDMLNet.forward: ||f(x2) - f(x1)||^2.

    Routed through plain fused XLA (per perf review): a ~50K-MAC problem cannot
    amortize a custom-call launch.  Use ddml_forward_pairs for the Pallas path.
    """
    h1, h2 = feature1, feature2
    for w, b in zip(weights, biases):
        h1 = jnp.tanh(h1 @ w.T + b)
        h2 = jnp.tanh(h2 @ w.T + b)
    d = h2 - h1
    return jnp.sum(d * d)


def init_ddml_params(layer_shape, key):
    """Matches DDMLNet.__init__: W ~ U(-stdv, stdv), stdv = sqrt(6/(fi+fo)), b = 0."""
    weights, biases = [], []
    for m in range(len(layer_shape) - 1):
        fan_in, fan_out = layer_shape[m], layer_shape[m + 1]
        stdv = math.sqrt(6.0 / (fan_in + fan_out))
        key, sub = jax.random.split(key)
        w = jax.random.uniform(sub, (fan_out, fan_in), dtype=jnp.float32,
                               minval=-stdv, maxval=stdv)
        weights.append(w)
        biases.append(jnp.zeros((fan_out,), dtype=jnp.float32))
    return weights, biases


def _reference_forward(feature1, feature2, weights, biases):
    """Plain-JAX reference for one pair (mirrors the PyTorch module)."""
    h1, h2 = feature1, feature2
    for w, b in zip(weights, biases):
        h1 = jnp.tanh(h1 @ w.T + b)
        h2 = jnp.tanh(h2 @ w.T + b)
    d = h2 - h1
    return jnp.sum(d * d)


if __name__ == "__main__":
    layer_shape = [32, 64, 16]
    key = jax.random.PRNGKey(0)
    key, kp = jax.random.split(key)
    weights, biases = init_ddml_params(layer_shape, kp)

    # --- Batched-pairs Pallas path: 200 pairs, batch 8 -> 4 grid blocks of 64 pairs.
    n_pairs, batch = 200, 8
    key, k1, k2 = jax.random.split(key, 3)
    f1 = jax.random.normal(k1, (n_pairs, batch, layer_shape[0]), jnp.float32)
    f2 = jax.random.normal(k2, (n_pairs, batch, layer_shape[0]), jnp.float32)
    out = jax.block_until_ready(ddml_forward_pairs(f1, f2, weights, biases))
    ref = jax.vmap(lambda a, b: _reference_forward(a, b, weights, biases))(f1, f2)
    assert out.shape == (n_pairs,)
    assert jnp.allclose(out, ref, rtol=1e-3, atol=1e-3), (out[:4], ref[:4])

    # --- Non-aligned case (P=3 pairs, batch=5) with nonzero biases: exercises
    #     pair/batch padding correctness.
    biases2 = [b + 0.1 * (i + 1) for i, b in enumerate(biases)]
    key, k3, k4 = jax.random.split(key, 3)
    g1 = jax.random.normal(k3, (3, 5, layer_shape[0]), jnp.float32)
    g2 = jax.random.normal(k4, (3, 5, layer_shape[0]), jnp.float32)
    out2 = jax.block_until_ready(ddml_forward_pairs(g1, g2, weights, biases2))
    ref2 = jax.vmap(lambda a, b: _reference_forward(a, b, weights, biases2))(g1, g2)
    assert jnp.allclose(out2, ref2, rtol=1e-3, atol=1e-3), (out2, ref2)

    # --- Single-pair forward (plain XLA, matches DDMLNet.forward exactly).
    s = jax.block_until_ready(ddml_forward(f1[0], f2[0], weights, biases))
    assert jnp.allclose(s, ref[0], rtol=1e-3, atol=1e-3), (s, ref[0])

    print("KERNEL_OK")
</pallas_src>

<mosaic_0001>
module attributes {stable_mosaic.version = 11 : i64} {
  func.func @kernel(%arg0: i32, %arg1: memref<1x1024x32xf32, #tpu.memory_space<vmem>>, %arg2: memref<64x512xf32, #tpu.memory_space<vmem>>, %arg3: memref<32x64xf32, #tpu.memory_space<vmem>>, %arg4: memref<1x64xf32, #tpu.memory_space<vmem>>, %arg5: memref<64x16xf32, #tpu.memory_space<vmem>>, %arg6: memref<1x16xf32, #tpu.memory_space<vmem>>, %arg7: memref<1x64x1xf32, #tpu.memory_space<vmem>>) attributes {dimension_semantics = [#tpu.dimension_semantics<parallel>], iteration_bounds = array<i64: 4>, scalar_prefetch = 0 : i64, scratch_operands = 0 : i64, tpu.core_type = #tpu.core_type<tc>, window_params = [{transform_indices = @transform_0, window_bounds = array<i64: 1, 1024, 32>}, {pipeline_mode = #tpu.pipeline_mode<synchronous>, transform_indices = @transform_1, window_bounds = array<i64: 64, 512>}, {pipeline_mode = #tpu.pipeline_mode<synchronous>, transform_indices = @transform_2, window_bounds = array<i64: 32, 64>}, {pipeline_mode = #tpu.pipeline_mode<synchronous>, transform_indices = @transform_3, window_bounds = array<i64: 1, 64>}, {pipeline_mode = #tpu.pipeline_mode<synchronous>, transform_indices = @transform_4, window_bounds = array<i64: 64, 16>}, {pipeline_mode = #tpu.pipeline_mode<synchronous>, transform_indices = @transform_5, window_bounds = array<i64: 1, 16>}, {transform_indices = @transform_6, window_bounds = array<i64: 1, 64, 1>}]} {
    %c0 = arith.constant 0 : index
    %c0_0 = arith.constant 0 : index
    %c0_1 = arith.constant 0 : index
    %0 = vector.load %arg1[%c0, %c0_0, %c0_1] : memref<1x1024x32xf32, #tpu.memory_space<vmem>>, vector<1x1024x32xf32>
    %1 = vector.shape_cast %0 : vector<1x1024x32xf32> to vector<1024x32xf32>
    %c0_2 = arith.constant 0 : index
    %c0_3 = arith.constant 0 : index
    %2 = vector.load %arg3[%c0_2, %c0_3] : memref<32x64xf32, #tpu.memory_space<vmem>>, vector<32x64xf32>
    %c0_4 = arith.constant 0 : index
    %c0_5 = arith.constant 0 : index
    %3 = vector.load %arg4[%c0_4, %c0_5] : memref<1x64xf32, #tpu.memory_space<vmem>>, vector<1x64xf32>
    %cst = arith.constant dense<0.000000e+00> : vector<1024x64xf32>
    %4 = tpu.matmul %1, %2, %cst {dimension_numbers = #tpu.dot_dimension_numbers<[1], [0], [0], [1], [0, 0, 1, 1], [], []>} : vector<1024x32xf32>, vector<32x64xf32>, vector<1024x64xf32> -> vector<1024x64xf32>
    %5 = vector.broadcast %3 : vector<1x64xf32> to vector<1024x64xf32>
    %6 = arith.addf %4, %5 : vector<1024x64xf32>
    %7 = math.tanh %6 : vector<1024x64xf32>
    %c0_6 = arith.constant 0 : index
    %c0_7 = arith.constant 0 : index
    %8 = vector.load %arg5[%c0_6, %c0_7] : memref<64x16xf32, #tpu.memory_space<vmem>>, vector<64x16xf32>
    %c0_8 = arith.constant 0 : index
    %c0_9 = arith.constant 0 : index
    %9 = vector.load %arg6[%c0_8, %c0_9] : memref<1x16xf32, #tpu.memory_space<vmem>>, vector<1x16xf32>
    %cst_10 = arith.constant dense<0.000000e+00> : vector<1024x16xf32>
    %10 = tpu.matmul %7, %8, %cst_10 {dimension_numbers = #tpu.dot_dimension_numbers<[1], [0], [0], [1], [0, 0, 1, 1], [], []>} : vector<1024x64xf32>, vector<64x16xf32>, vector<1024x16xf32> -> vector<1024x16xf32>
    %11 = vector.broadcast %9 : vector<1x16xf32> to vector<1024x16xf32>
    %12 = arith.addf %10, %11 : vector<1024x16xf32>
    %13 = math.tanh %12 : vector<1024x16xf32>
    %14 = vector.extract_strided_slice %13 {offsets = [512, 0], sizes = [512, 16], strides = [1, 1]} : vector<1024x16xf32> to vector<512x16xf32>
    %15 = vector.extract_strided_slice %13 {offsets = [0, 0], sizes = [512, 16], strides = [1, 1]} : vector<1024x16xf32> to vector<512x16xf32>
    %16 = arith.subf %14, %15 : vector<512x16xf32>
    %17 = arith.mulf %16, %16 : vector<512x16xf32>
    %cst_11 = arith.constant dense<0.000000e+00> : vector<512xf32>
    %18 = vector.multi_reduction <add>, %17, %cst_11 [1] : vector<512x16xf32> to vector<512xf32>
    %19 = vector.shape_cast %18 : vector<512xf32> to vector<512x1xf32>
    %c0_12 = arith.constant 0 : index
    %c0_13 = arith.constant 0 : index
    %20 = vector.load %arg2[%c0_12, %c0_13] : memref<64x512xf32, #tpu.memory_space<vmem>>, vector<64x512xf32>
    %cst_14 = arith.constant dense<0.000000e+00> : vector<64x1xf32>
    %21 = tpu.matmul %20, %19, %cst_14 {dimension_numbers = #tpu.dot_dimension_numbers<[1], [0], [0], [1], [0, 0, 1, 1], [], []>} : vector<64x512xf32>, vector<512x1xf32>, vector<64x1xf32> -> vector<64x1xf32>
    %c0_15 = arith.constant 0 : index
    %c0_16 = arith.constant 0 : index
    %c0_17 = arith.constant 0 : index
    %22 = vector.load %arg7[%c0_15, %c0_16, %c0_17] : memref<1x64x1xf32, #tpu.memory_space<vmem>>, vector<1x64x1xf32>
    %23 = vector.shape_cast %22 : vector<1x64x1xf32> to vector<64x1xf32>
    %24 = vector.shape_cast %21 : vector<64x1xf32> to vector<1x64x1xf32>
    tpu.vector_store %arg7[%c0_15, %c0_16, %c0_17], %24 {strides = array<i32>} : memref<1x64x1xf32, #tpu.memory_space<vmem>>, vector<1x64x1xf32>,
    return
  }
  func.func @transform_0(%arg0: i32) -> (i32, i32, i32) {
    %c0_i32 = arith.constant 0 : i32
    %c0_i32_0 = arith.constant 0 : i32
    %c0_i32_1 = arith.constant 0 : i32
    return %arg0, %c0_i32, %c0_i32_0 : i32, i32, i32
  }
  func.func @transform_1(%arg0: i32) -> (i32, i32) {
    %c0_i32 = arith.constant 0 : i32
    %c0_i32_0 = arith.constant 0 : i32
    %c0_i32_1 = arith.constant 0 : i32
    return %c0_i32, %c0_i32_0 : i32, i32
  }
  func.func @transform_2(%arg0: i32) -> (i32, i32) {
    %c0_i32 = arith.constant 0 : i32
    %c0_i32_0 = arith.constant 0 : i32
    %c0_i32_1 = arith.constant 0 : i32
    return %c0_i32, %c0_i32_0 : i32, i32
  }
  func.func @transform_3(%arg0: i32) -> (i32, i32) {
    %c0_i32 = arith.constant 0 : i32
    %c0_i32_0 = arith.constant 0 : i32
    %c0_i32_1 = arith.constant 0 : i32
    return %c0_i32, %c0_i32_0 : i32, i32
  }
  func.func @transform_4(%arg0: i32) -> (i32, i32) {
    %c0_i32 = arith.constant 0 : i32
    %c0_i32_0 = arith.constant 0 : i32
    %c0_i32_1 = arith.constant 0 : i32
    return %c0_i32, %c0_i32_0 : i32, i32
  }
  func.func @transform_5(%arg0: i32) -> (i32, i32) {
    %c0_i32 = arith.constant 0 : i32
    %c0_i32_0 = arith.constant 0 : i32
    %c0_i32_1 = arith.constant 0 : i32
    return %c0_i32, %c0_i32_0 : i32, i32
  }
  func.func @transform_6(%arg0: i32) -> (i32, i32, i32) {
    %c0_i32 = arith.constant 0 : i32
    %c0_i32_0 = arith.constant 0 : i32
    %c0_i32_1 = arith.constant 0 : i32
    return %arg0, %c0_i32, %c0_i32_0 : i32, i32, i32
  }
}

</mosaic_0001>

<bundles_post_ra>
// kernel: ddml_forward_pairs.1
= control target key start
LH: loop header
LB: loop body
LE: loop exit
PB: predicated region body
PF: predicated region fallthrough
CT: control target
= control target key end

     0   :  { %s5197_s21 = smov 0   ;;  %s6459_s0 = inlined_call_operand.vmem [shape: f32[4,1024,32], index: 0, kind: input, shape index: {}]   ;;  %s6460_s1 = inlined_call_operand.vmem [shape: f32[64,512], index: 1, kind: input, shape index: {}]   ;;  %s6461_s2 = inlined_call_operand.vmem [shape: f32[32,64], index: 2, kind: input, shape index: {}]   ;;  %s6462_s3 = inlined_call_operand.vmem [shape: f32[1,64], index: 3, kind: input, shape index: {}]   ;;  %s6463_s4 = inlined_call_operand.vmem [shape: f32[64,16], index: 4, kind: input, shape index: {}]   ;;  %s6464_s5 = inlined_call_operand.vmem [shape: f32[1,16], index: 5, kind: input, shape index: {}]   ;;  %s6465_s6 = inlined_call_operand.vmem [shape: f32[4,64,1], index: 6, kind: output, shape index: {}]  }
   0x1 LB: > { %s3469_s22 = sadd.s32 4294967295, %s5160_s21   ;;  %p3473_p0 = scmp.ge.s32.totalorder %s5160_s21, 1  ;;  %s5160_s21 = sphi %s5197_s21, %s16_s21  }
   0x2   : > { %p212_p1 = scmp.lt.s32.totalorder %s5160_s21, 5 }
   0x4   : > { %p213_p2 = pnand %p3473_p0, %p212_p1 }
   0x6   : > { %216 = sbr.rel (%p213_p2) target bundleno = 1127 (0x467), region = 44 }
   0xd   : > { %v380_v0 = vld [vmem:[%s6461_s2] sm:$0xff]  ;;  %v381_v1 = vld [vmem:[%s6461_s2 + $0x8] sm:$0xff]  ;;  %v382_v2 = vld [vmem:[%s6461_s2 + $0x10] sm:$0xff]  ;;  %p242_p3 = scmp.lt.s32.totalorder %s3469_s22, 3  ;;  %vm391_vm0 = vcmask 261120   ;;  %vm1624_vm1 = vcmask 523264  }
   0xe   : > { %v4528_v3 = vpack.c.bf16 %v381_v1, %v380_v0  ;;  %v383_v4 = vld [vmem:[%s6461_s2 + $0x18] sm:$0xff]  ;;  %v1609_v49 = vld [vmem:[%s6463_s4] sm:$0xff]  ;;  %v1610_v50 = vld [vmem:[%s6463_s4 + $0x8] sm:$0xff]  ;;  %vm2970_vm2 = vcmask 130048   ;;  %vm3405_vm3 = vcmask 7168  }
   0xf   : > { %v4532_v5 = vpack.c.bf16 %v383_v4, %v382_v2  ;;  %s6487_s22 = smov (!%p242_p3, %s3469_s22), 3  ;;  %v4536_v52 = vpack.c.bf16 %v1610_v50, %v1609_v49  ;;  %v1611_v54 = vld [vmem:[%s6463_s4 + $0x10] sm:$0xff]  ;;  %v1612_v55 = vld [vmem:[%s6463_s4 + $0x18] sm:$0xff]  ;;  %v1613_v59 = vld [vmem:[%s6463_s4 + $0x20] sm:$0xff] }
  0x10   : > { %4529 = vmatprep.subr.bf16.mxu0 %v4528_v3  ;;  %s3738_s7 = sshll.u32 %s6487_s22, 10  ;;  %v4540_v57 = vpack.c.bf16 %v1612_v55, %v1611_v54  ;;  %v1614_v60 = vld [vmem:[%s6463_s4 + $0x28] sm:$0xff]  ;;  %v1615_v0 = vld [vmem:[%s6463_s4 + $0x30] sm:$0xff]  ;;  %v1616_v1 = vld [vmem:[%s6463_s4 + $0x38] sm:$0xff]  ;;  %s3739_s11 = sshll.u32 %s6487_s22, 6 }
  0x11   : > { %4531 = vmatpush3.bf16.msra.mxu0 %v4528_v3  ;;  %s5223_s10 = scalar_lea.vmem %s6459_s0, %s3738_s7  ;;  %4537 = vmatprep.subr.bf16.mxu1 %v4536_v52  ;;  %v4544_v62 = vpack.c.bf16 %v1614_v60, %v1613_v59  ;;  %v4548_v3 = vpack.c.bf16 %v1616_v1, %v1615_v0  ;;  %s6438_s14 = scalar_lea.vmem %s6465_s6, %s3739_s11 }
  0x12   : > { %4533 = vmatprep.subr.bf16.mxu0 %v4532_v5  ;;  %v252_v6 = vld [vmem:[%s5223_s10] sm:$0xff]  ;;  %v253_v7 = vld [vmem:[%s5223_s10 + $0x8] sm:$0xff]  ;;  %v254_v8 = vld [vmem:[%s5223_s10 + $0x10] sm:$0xff]  ;;  %4539 = vmatpush3.bf16.msra.mxu1 %v4536_v52 }
  0x13   : > { %4128 = vmatprep.mubr.msk.f32.mxu0 %vm391_vm0, %v252_v6  ;;  %v255_v9 = vld [vmem:[%s5223_s10 + $0x18] sm:$0xff]  ;;  %v256_v10 = vld [vmem:[%s5223_s10 + $0x20] sm:$0xff]  ;;  %v257_v11 = vld [vmem:[%s5223_s10 + $0x28] sm:$0xff]  ;;  %4541 = vmatprep.subr.bf16.mxu1 %v4540_v57 }
  0x14   : > { %v258_v12 = vld [vmem:[%s5223_s10 + $0x30] sm:$0xff]  ;;  %v259_v13 = vld [vmem:[%s5223_s10 + $0x38] sm:$0xff]  ;;  %v260_v14 = vld [vmem:[%s5223_s10 + $0x40] sm:$0xff] }
  0x15   : > { %4535 = vmatpush3.bf16.msra.mxu0 %v4532_v5  ;;  %v261_v15 = vld [vmem:[%s5223_s10 + $0x48] sm:$0xff]  ;;  %v262_v16 = vld [vmem:[%s5223_s10 + $0x50] sm:$0xff]  ;;  %v263_v17 = vld [vmem:[%s5223_s10 + $0x58] sm:$0xff] }
  0x16   : > { %v264_v18 = vld [vmem:[%s5223_s10 + $0x60] sm:$0xff]  ;;  %v265_v19 = vld [vmem:[%s5223_s10 + $0x68] sm:$0xff]  ;;  %v266_v20 = vld [vmem:[%s5223_s10 + $0x70] sm:$0xff]  ;;  %4543 = vmatpush3.bf16.msra.mxu1 %v4540_v57 }
  0x17   : > { %v267_v21 = vld [vmem:[%s5223_s10 + $0x78] sm:$0xff]  ;;  %v268_v22 = vld [vmem:[%s5223_s10 + $0x80] sm:$0xff]  ;;  %v269_v23 = vld [vmem:[%s5223_s10 + $0x88] sm:$0xff]  ;;  %4545 = vmatprep.subr.bf16.mxu1 %v4544_v62 }
  0x18   : > { %4129 = vmatmul.mubr.msk.f32.vlgmr.msra.gmra.mrb[0].mxu0 %vm391_vm0, %v253_v7  ;;  %v270_v24 = vld [vmem:[%s5223_s10 + $0x90] sm:$0xff]  ;;  %v271_v25 = vld [vmem:[%s5223_s10 + $0x98] sm:$0xff]  ;;  %v272_v26 = vld [vmem:[%s5223_s10 + $0xa0] sm:$0xff] }
  0x19   : > { %4131 = vmatprep.mubr.msk.f32.mxu0 %vm391_vm0, %v254_v8  ;;  %v273_v27 = vld [vmem:[%s5223_s10 + $0xa8] sm:$0xff]  ;;  %v274_v28 = vld [vmem:[%s5223_s10 + $0xb0] sm:$0xff]  ;;  %v275_v29 = vld [vmem:[%s5223_s10 + $0xb8] sm:$0xff] }
  0x1a   : > { %v276_v30 = vld [vmem:[%s5223_s10 + $0xc0] sm:$0xff]  ;;  %v277_v31 = vld [vmem:[%s5223_s10 + $0xc8] sm:$0xff]  ;;  %v278_v32 = vld [vmem:[%s5223_s10 + $0xd0] sm:$0xff]  ;;  %4547 = vmatpush3.bf16.msra.mxu1 %v4544_v62 }
  0x1b   : > { %v279_v33 = vld [vmem:[%s5223_s10 + $0xd8] sm:$0xff]  ;;  %v280_v34 = vld [vmem:[%s5223_s10 + $0xe0] sm:$0xff]  ;;  %v281_v35 = vld [vmem:[%s5223_s10 + $0xe8] sm:$0xff]  ;;  %4549 = vmatprep.subr.bf16.mxu1 %v4548_v3 }
  0x1c   : > { %4132 = vmatmul.mubr.msk.f32.gmra.mrb[2].mxu0 %vm391_vm0, %v255_v9  ;;  %v282_v36 = vld [vmem:[%s5223_s10 + $0xf0] sm:$0xff]  ;;  %v283_v37 = vld [vmem:[%s5223_s10 + $0xf8] sm:$0xff]  ;;  %v284_v38 = vld [vmem:[%s5223_s10 + $0x100] sm:$0xff] }
  0x1d   : > { %4134 = vmatprep.mubr.msk.f32.mxu0 %vm391_vm0, %v256_v10  ;;  %v285_v39 = vld [vmem:[%s5223_s10 + $0x108] sm:$0xff]  ;;  %v286_v40 = vld [vmem:[%s5223_s10 + $0x110] sm:$0xff]  ;;  %v287_v41 = vld [vmem:[%s5223_s10 + $0x118] sm:$0xff] }
  0x1e   : > { %v288_v42 = vld [vmem:[%s5223_s10 + $0x120] sm:$0xff]  ;;  %v289_v43 = vld [vmem:[%s5223_s10 + $0x128] sm:$0xff]  ;;  %v290_v44 = vld [vmem:[%s5223_s10 + $0x130] sm:$0xff]  ;;  %4551 = vmatpush3.bf16.msra.mxu1 %v4548_v3 }
  0x1f   : > { %v291_v45 = vld [vmem:[%s5223_s10 + $0x138] sm:$0xff]  ;;  %v292_v46 = vld [vmem:[%s5223_s10 + $0x140] sm:$0xff]  ;;  %v293_v47 = vld [vmem:[%s5223_s10 + $0x148] sm:$0xff] }
  0x20   : > { %4135 = vmatmul.mubr.msk.f32.gmra.mrb[4].mxu0 %vm391_vm0, %v257_v11  ;;  %v294_v48 = vld [vmem:[%s5223_s10 + $0x150] sm:$0xff]  ;;  %v295_v51 = vld [vmem:[%s5223_s10 + $0x158] sm:$0xff]  ;;  %v296_v53 = vld [vmem:[%s5223_s10 + $0x160] sm:$0xff] }
  0x21   : > { %4137 = vmatprep.mubr.msk.f32.mxu0 %vm391_vm0, %v258_v12  ;;  %v297_v56 = vld [vmem:[%s5223_s10 + $0x168] sm:$0xff]  ;;  %v298_v58 = vld [vmem:[%s5223_s10 + $0x170] sm:$0xff]  ;;  %v299_v61 = vld [vmem:[%s5223_s10 + $0x178] sm:$0xff] }
  0x22   : > { %v300_v63 = vld [vmem:[%s5223_s10 + $0x180] sm:$0xff]  ;;  %v301_v2 = vld [vmem:[%s5223_s10 + $0x188] sm:$0xff]  ;;  %v302_v4 = vld [vmem:[%s5223_s10 + $0x190] sm:$0xff] }
  0x23   : > { %v303_v5 = vld [vmem:[%s5223_s10 + $0x198] sm:$0xff]  ;;  %v304_v6 = vld [vmem:[%s5223_s10 + $0x1a0] sm:$0xff]  ;;  %v305_v7 = vld [vmem:[%s5223_s10 + $0x1a8] sm:$0xff] }
  0x24   : > { %4138 = vmatmul.mubr.msk.f32.gmra.mrb[6].mxu0 %vm391_vm0, %v259_v13  ;;  %v306_v8 = vld [vmem:[%s5223_s10 + $0x1b0] sm:$0xff]  ;;  %v307_v9 = vld [vmem:[%s5223_s10 + $0x1b8] sm:$0xff]  ;;  %v308_v10 = vld [vmem:[%s5223_s10 + $0x1c0] sm:$0xff] }
  0x25   : > { %4140 = vmatprep.mubr.msk.f32.mxu0 %vm391_vm0, %v260_v14  ;;  %v309_v11 = vld [vmem:[%s5223_s10 + $0x1c8] sm:$0xff]  ;;  %v310_v12 = vld [vmem:[%s5223_s10 + $0x1d0] sm:$0xff]  ;;  %v311_v13 = vld [vmem:[%s5223_s10 + $0x1d8] sm:$0xff] }
  0x26   : > { %v312_v14 = vld [vmem:[%s5223_s10 + $0x1e0] sm:$0xff]  ;;  %v347_v49 = vld [vmem:[%s5223_s10 + $0x2f8] sm:$0xff]  ;;  %v350_v52 = vld [vmem:[%s5223_s10 + $0x310] sm:$0xff] }
  0x27   : > { %v348_v50 = vld [vmem:[%s5223_s10 + $0x300] sm:$0xff]  ;;  %v353_v55 = vld [vmem:[%s5223_s10 + $0x328] sm:$0xff]  ;;  %v355_v57 = vld [vmem:[%s5223_s10 + $0x338] sm:$0xff] }
  0x28   : > { %4141 = vmatmul.mubr.msk.f32.gmra.mrb[8].mxu0 %vm391_vm0, %v261_v15  ;;  %v313_v15 = vld [vmem:[%s5223_s10 + $0x1e8] sm:$0xff]  ;;  %v352_v54 = vld [vmem:[%s5223_s10 + $0x320] sm:$0xff]  ;;  %v358_v60 = vld [vmem:[%s5223_s10 + $0x350] sm:$0xff] }
  0x29   : > { %4143 = vmatprep.mubr.msk.f32.mxu0 %vm391_vm0, %v262_v16  ;;  %v314_v16 = vld [vmem:[%s5223_s10 + $0x1f0] sm:$0xff]  ;;  %v357_v59 = vld [vmem:[%s5223_s10 + $0x348] sm:$0xff]  ;;  %v359_v62 = vld [vmem:[%s5223_s10 + $0x358] sm:$0xff] }
  0x2c   : > { %4144 = vmatmul.mubr.msk.f32.gmra.mrb[10].mxu0 %vm391_vm0, %v263_v17  ;;  %v315_v17 = vld [vmem:[%s5223_s10 + $0x1f8] sm:$0xff] }
  0x2d   : > { %4146 = vmatprep.mubr.msk.f32.mxu0 %vm391_vm0, %v264_v18  ;;  %v316_v18 = vld [vmem:[%s5223_s10 + $0x200] sm:$0xff] }
  0x30   : > { %4147 = vmatmul.mubr.msk.f32.gmra.mrb[12].mxu0 %vm391_vm0, %v265_v19  ;;  %v317_v19 = vld [vmem:[%s5223_s10 + $0x208] sm:$0xff] }
  0x31   : > { %4149 = vmatprep.mubr.msk.f32.mxu0 %vm391_vm0, %v266_v20  ;;  %v318_v20 = vld [vmem:[%s5223_s10 + $0x210] sm:$0xff] }
  0x34   : > { %4150 = vmatmul.mubr.msk.f32.gmra.mrb[14].mxu0 %vm391_vm0, %v267_v21  ;;  %v319_v21 = vld [vmem:[%s5223_s10 + $0x218] sm:$0xff] }
  0x35   : > { %4152 = vmatprep.mubr.msk.f32.mxu0 %vm391_vm0, %v268_v22  ;;  %v320_v22 = vld [vmem:[%s5223_s10 + $0x220] sm:$0xff] }
  0x38   : > { %4153 = vmatmul.mubr.msk.f32.gmra.mrb[16].mxu0 %vm391_vm0, %v269_v23  ;;  %v321_v23 = vld [vmem:[%s5223_s10 + $0x228] sm:$0xff] }
  0x39   : > { %4155 = vmatprep.mubr.msk.f32.mxu0 %vm391_vm0, %v270_v24  ;;  %v322_v24 = vld [vmem:[%s5223_s10 + $0x230] sm:$0xff] }
  0x3c   : > { %4156 = vmatmul.mubr.msk.f32.gmra.mrb[18].mxu0 %vm391_vm0, %v271_v25  ;;  %v323_v25 = vld [vmem:[%s5223_s10 + $0x238] sm:$0xff] }
  0x3d   : > { %4158 = vmatprep.mubr.msk.f32.mxu0 %vm391_vm0, %v272_v26  ;;  %v324_v26 = vld [vmem:[%s5223_s10 + $0x240] sm:$0xff] }
  0x40   : > { %4159 = vmatmul.mubr.msk.f32.gmra.mrb[20].mxu0 %vm391_vm0, %v273_v27  ;;  %v325_v27 = vld [vmem:[%s5223_s10 + $0x248] sm:$0xff] }
  0x41   : > { %4161 = vmatprep.mubr.msk.f32.mxu0 %vm391_vm0, %v274_v28  ;;  %v326_v28 = vld [vmem:[%s5223_s10 + $0x250] sm:$0xff] }
  0x44   : > { %4162 = vmatmul.mubr.msk.f32.gmra.mrb[22].mxu0 %vm391_vm0, %v275_v29  ;;  %v327_v29 = vld [vmem:[%s5223_s10 + $0x258] sm:$0xff] }
  0x45   : > { %4164 = vmatprep.mubr.msk.f32.mxu0 %vm391_vm0, %v276_v30  ;;  %v328_v30 = vld [vmem:[%s5223_s10 + $0x260] sm:$0xff] }
  0x48   : > { %4165 = vmatmul.mubr.msk.f32.gmra.mrb[24].mxu0 %vm391_vm0, %v277_v31  ;;  %v329_v31 = vld [vmem:[%s5223_s10 + $0x268] sm:$0xff] }
  0x49   : > { %4167 = vmatprep.mubr.msk.f32.mxu0 %vm391_vm0, %v278_v32  ;;  %v330_v32 = vld [vmem:[%s5223_s10 + $0x270] sm:$0xff] }
  0x4c   : > { %4168 = vmatmul.mubr.msk.f32.gmra.mrb[26].mxu0 %vm391_vm0, %v279_v33  ;;  %v331_v33 = vld [vmem:[%s5223_s10 + $0x278] sm:$0xff] }
  0x4d   : > { %4170 = vmatprep.mubr.msk.f32.mxu0 %vm391_vm0, %v280_v34  ;;  %v332_v34 = vld [vmem:[%s5223_s10 + $0x280] sm:$0xff] }
  0x50   : > { %4171 = vmatmul.mubr.msk.f32.gmra.mrb[28].mxu0 %vm391_vm0, %v281_v35  ;;  %v333_v35 = vld [vmem:[%s5223_s10 + $0x288] sm:$0xff] }
  0x51   : > { %4173 = vmatprep.mubr.msk.f32.mxu0 %vm391_vm0, %v282_v36  ;;  %v334_v36 = vld [vmem:[%s5223_s10 + $0x290] sm:$0xff] }
  0x54   : > { %4174 = vmatmul.mubr.msk.f32.gmra.mrb[30].mxu0 %vm391_vm0, %v283_v37  ;;  %v335_v37 = vld [vmem:[%s5223_s10 + $0x298] sm:$0xff] }
  0x55   : > { %4176 = vmatprep.mubr.msk.f32.mxu0 %vm391_vm0, %v284_v38  ;;  %v336_v38 = vld [vmem:[%s5223_s10 + $0x2a0] sm:$0xff] }
  0x58   : > { %4177 = vmatmul.mubr.msk.f32.gmra.mrb[32].mxu0 %vm391_vm0, %v285_v39  ;;  %v337_v39 = vld [vmem:[%s5223_s10 + $0x2a8] sm:$0xff] }
  0x59   : > { %4179 = vmatprep.mubr.msk.f32.mxu0 %vm391_vm0, %v286_v40  ;;  %v338_v40 = vld [vmem:[%s5223_s10 + $0x2b0] sm:$0xff] }
  0x5c   : > { %4180 = vmatmul.mubr.msk.f32.gmra.mrb[34].mxu0 %vm391_vm0, %v287_v41  ;;  %v339_v41 = vld [vmem:[%s5223_s10 + $0x2b8] sm:$0xff] }
  0x5d   : > { %4182 = vmatprep.mubr.msk.f32.mxu0 %vm391_vm0, %v288_v42  ;;  %v340_v42 = vld [vmem:[%s5223_s10 + $0x2c0] sm:$0xff] }
  0x60   : > { %4183 = vmatmul.mubr.msk.f32.gmra.mrb[36].mxu0 %vm391_vm0, %v289_v43  ;;  %v341_v43 = vld [vmem:[%s5223_s10 + $0x2c8] sm:$0xff] }
  0x61   : > { %4185 = vmatprep.mubr.msk.f32.mxu0 %vm391_vm0, %v290_v44  ;;  %v342_v44 = vld [vmem:[%s5223_s10 + $0x2d0] sm:$0xff] }
  0x64   : > { %4186 = vmatmul.mubr.msk.f32.gmra.mrb[38].mxu0 %vm391_vm0, %v291_v45  ;;  %v343_v45 = vld [vmem:[%s5223_s10 + $0x2d8] sm:$0xff] }
  0x65   : > { %4188 = vmatprep.mubr.msk.f32.mxu0 %vm391_vm0, %v292_v46  ;;  %v344_v46 = vld [vmem:[%s5223_s10 + $0x2e0] sm:$0xff] }
  0x68   : > { %4189 = vmatmul.mubr.msk.f32.gmra.mrb[40].mxu0 %vm391_vm0, %v293_v47  ;;  %v345_v47 = vld [vmem:[%s5223_s10 + $0x2e8] sm:$0xff] }
  0x69   : > { %4191 = vmatprep.mubr.msk.f32.mxu0 %vm391_vm0, %v294_v48  ;;  %v346_v48 = vld [vmem:[%s5223_s10 + $0x2f0] sm:$0xff] }
  0x6c   : > { %4192 = vmatmul.mubr.msk.f32.gmra.mrb[42].mxu0 %vm391_vm0, %v295_v51  ;;  %v349_v51 = vld [vmem:[%s5223_s10 + $0x308] sm:$0xff] }
  0x6d   : > { %4194 = vmatprep.mubr.msk.f32.mxu0 %vm391_vm0, %v296_v53  ;;  %v351_v53 = vld [vmem:[%s5223_s10 + $0x318] sm:$0xff] }
  0x70   : > { %4195 = vmatmul.mubr.msk.f32.gmra.mrb[44].mxu0 %vm391_vm0, %v297_v56  ;;  %v354_v56 = vld [vmem:[%s5223_s10 + $0x330] sm:$0xff] }
  0x71   : > { %4197 = vmatprep.mubr.msk.f32.mxu0 %vm391_vm0, %v298_v58  ;;  %v356_v58 = vld [vmem:[%s5223_s10 + $0x340] sm:$0xff] }
  0x74   : > { %4198 = vmatmul.mubr.msk.f32.gmra.mrb[46].mxu0 %vm391_vm0, %v299_v61  ;;  %v5465_v61 = vld [vmem:[%s6462_s3] ss:$0 sm:$0xff] }
  0x75   : > { %4200 = vmatprep.mubr.msk.f32.mxu0 %vm391_vm0, %v300_v63  ;;  %v360_v63 = vld [vmem:[%s5223_s10 + $0x360] sm:$0xff] }
  0x78   : > { %4201 = vmatmul.mubr.msk.f32.gmra.mrb[48].mxu0 %vm391_vm0, %v301_v2 }
  0x79   : > { %4203 = vmatprep.mubr.msk.f32.mxu0 %vm391_vm0, %v302_v4  ;;  %v361_v4 = vld [vmem:[%s5223_s10 + $0x368] sm:$0xff] }
  0x7c   : > { %4204 = vmatmul.mubr.msk.f32.gmra.mrb[50].mxu0 %vm391_vm0, %v303_v5  ;;  %v362_v5 = vld [vmem:[%s5223_s10 + $0x370] sm:$0xff] }
  0x7d   : > { %4206 = vmatprep.mubr.msk.f32.mxu0 %vm391_vm0, %v304_v6 }
  0x80   : > { %4207 = vmatmul.mubr.msk.f32.gmra.mrb[52].mxu0 %vm391_vm0, %v305_v7 }
  0x81   : > { %4209 = vmatprep.mubr.msk.f32.mxu0 %vm391_vm0, %v306_v8 }
  0x84   : > { %4210 = vmatmul.mubr.msk.f32.gmra.mrb[54].mxu0 %vm391_vm0, %v307_v9 }
  0x85   : > { %4212 = vmatprep.mubr.msk.f32.mxu0 %vm391_vm0, %v308_v10  ;;  %v363_v10 = vld [vmem:[%s5223_s10 + $0x378] sm:$0xff] }
  0x88   : > { %4213 = vmatmul.mubr.msk.f32.gmra.mrb[56].mxu0 %vm391_vm0, %v309_v11  ;;  %v364_v11 = vld [vmem:[%s5223_s10 + $0x380] sm:$0xff] }
  0x89   : > { %4215 = vmatprep.mubr.msk.f32.mxu0 %vm391_vm0, %v310_v12 }
  0x8c   : > { %4216 = vmatmul.mubr.msk.f32.gmra.mrb[58].mxu0 %vm391_vm0, %v311_v13 }
  0x8d   : > { %4218 = vmatprep.mubr.msk.f32.mxu0 %vm391_vm0, %v312_v14 }
  0x90   : > { %4219 = vmatmul.mubr.msk.f32.gmra.mrb[60].mxu0 %vm391_vm0, %v313_v15 }
  0x91   : > { %4221 = vmatprep.mubr.msk.f32.mxu0 %vm391_vm0, %v314_v16  ;;  %v365_v16 = vld [vmem:[%s5223_s10 + $0x388] sm:$0xff] }
  0x94   : > { %4222 = vmatmul.mubr.msk.f32.gmra.mrb[62].mxu0 %vm391_vm0, %v315_v17  ;;  %v366_v17 = vld [vmem:[%s5223_s10 + $0x390] sm:$0xff] }
  0x95   : > { %4224 = vmatprep.mubr.msk.f32.mxu0 %vm391_vm0, %v316_v18 }
  0x98   : > { %4225 = vmatmul.mubr.msk.f32.gmra.mrb[64].mxu0 %vm391_vm0, %v317_v19 }
  0x99   : > { %4227 = vmatprep.mubr.msk.f32.mxu0 %vm391_vm0, %v318_v20 }
  0x9c   : > { %4228 = vmatmul.mubr.msk.f32.gmra.mrb[66].mxu0 %vm391_vm0, %v319_v21 }
  0x9d   : > { %4230 = vmatprep.mubr.msk.f32.mxu0 %vm391_vm0, %v320_v22 }
  0xa0   : > { %4231 = vmatmul.mubr.msk.f32.gmra.mrb[68].mxu0 %vm391_vm0, %v321_v23  ;;  %v367_v23 = vld [vmem:[%s5223_s10 + $0x398] sm:$0xff] }
  0xa1   : > { %4233 = vmatprep.mubr.msk.f32.mxu0 %vm391_vm0, %v322_v24 }
  0xa4   : > { %4234 = vmatmul.mubr.msk.f32.gmra.mrb[70].mxu0 %vm391_vm0, %v323_v25  ;;  %v368_v25 = vld [vmem:[%s5223_s10 + $0x3a0] sm:$0xff] }
  0xa5   : > { %4236 = vmatprep.mubr.msk.f32.mxu0 %vm391_vm0, %v324_v26 }
  0xa8   : > { %4237 = vmatmul.mubr.msk.f32.gmra.mrb[72].mxu0 %vm391_vm0, %v325_v27 }
  0xa9   : > { %4239 = vmatprep.mubr.msk.f32.mxu0 %vm391_vm0, %v326_v28 }
  0xac   : > { %4240 = vmatmul.mubr.msk.f32.gmra.mrb[74].mxu0 %vm391_vm0, %v327_v29 }
  0xad   : > { %4242 = vmatprep.mubr.msk.f32.mxu0 %vm391_vm0, %v328_v30 }
  0xb0   : > { %4243 = vmatmul.mubr.msk.f32.gmra.mrb[76].mxu0 %vm391_vm0, %v329_v31  ;;  %v369_v31 = vld [vmem:[%s5223_s10 + $0x3a8] sm:$0xff] }
  0xb1   : > { %4245 = vmatprep.mubr.msk.f32.mxu0 %vm391_vm0, %v330_v32 }
  0xb4   : > { %4246 = vmatmul.mubr.msk.f32.gmra.mrb[78].mxu0 %vm391_vm0, %v331_v33  ;;  %v370_v33 = vld [vmem:[%s5223_s10 + $0x3b0] sm:$0xff] }
  0xb5   : > { %4248 = vmatprep.mubr.msk.f32.mxu0 %vm391_vm0, %v332_v34 }
  0xb8   : > { %4249 = vmatmul.mubr.msk.f32.gmra.mrb[80].mxu0 %vm391_vm0, %v333_v35 }
  0xb9   : > { %4251 = vmatprep.mubr.msk.f32.mxu0 %vm391_vm0, %v334_v36 }
  0xbc   : > { %4252 = vmatmul.mubr.msk.f32.gmra.mrb[82].mxu0 %vm391_vm0, %v335_v37 }
  0xbd   : > { %4254 = vmatprep.mubr.msk.f32.mxu0 %vm391_vm0, %v336_v38 }
  0xc0   : > { %4255 = vmatmul.mubr.msk.f32.gmra.mrb[84].mxu0 %vm391_vm0, %v337_v39  ;;  %v371_v39 = vld [vmem:[%s5223_s10 + $0x3b8] sm:$0xff] }
  0xc1   : > { %4257 = vmatprep.mubr.msk.f32.mxu0 %vm391_vm0, %v338_v40 }
  0xc4   : > { %4258 = vmatmul.mubr.msk.f32.gmra.mrb[86].mxu0 %vm391_vm0, %v339_v41  ;;  %v372_v41 = vld [vmem:[%s5223_s10 + $0x3c0] sm:$0xff] }
  0xc5   : > { %4260 = vmatprep.mubr.msk.f32.mxu0 %vm391_vm0, %v340_v42 }
  0xc8   : > { %4261 = vmatmul.mubr.msk.f32.gmra.mrb[88].mxu0 %vm391_vm0, %v341_v43 }
  0xc9   : > { %4263 = vmatprep.mubr.msk.f32.mxu0 %vm391_vm0, %v342_v44 }
  0xcc   : > { %4264 = vmatmul.mubr.msk.f32.gmra.mrb[90].mxu0 %vm391_vm0, %v343_v45 }
  0xcd   : > { %4266 = vmatprep.mubr.msk.f32.mxu0 %vm391_vm0, %v344_v46 }
  0xd0   : > { %4267 = vmatmul.mubr.msk.f32.gmra.mrb[92].mxu0 %vm391_vm0, %v345_v47  ;;  %v373_v47 = vld [vmem:[%s5223_s10 + $0x3c8] sm:$0xff] }
  0xd1   : > { %4269 = vmatprep.mubr.msk.f32.mxu0 %vm391_vm0, %v346_v48 }
  0xd4   : > { %4270 = vmatmul.mubr.msk.f32.gmra.mrb[94].mxu0 %vm391_vm0, %v347_v49  ;;  %v374_v49 = vld [vmem:[%s5223_s10 + $0x3d0] sm:$0xff] }
  0xd5   : > { %4272 = vmatprep.mubr.msk.f32.mxu0 %vm391_vm0, %v348_v50 }
  0xd8   : > { %4273 = vmatmul.mubr.msk.f32.gmra.mrb[96].mxu0 %vm391_vm0, %v349_v51 }
  0xd9   : > { %4275 = vmatprep.mubr.msk.f32.mxu0 %vm391_vm0, %v350_v52 }
  0xdc   : > { %4276 = vmatmul.mubr.msk.f32.gmra.mrb[98].mxu0 %vm391_vm0, %v351_v53 }
  0xdd   : > { %4278 = vmatprep.mubr.msk.f32.mxu0 %vm391_vm0, %v352_v54 }
  0xe0   : > { %4279 = vmatmul.mubr.msk.f32.gmra.mrb[100].mxu0 %vm391_vm0, %v353_v55  ;;  %v375_v55 = vld [vmem:[%s5223_s10 + $0x3d8] sm:$0xff] }
  0xe1   : > { %4281 = vmatprep.mubr.msk.f32.mxu0 %vm391_vm0, %v354_v56 }
  0xe4   : > { %4282 = vmatmul.mubr.msk.f32.gmra.mrb[102].mxu0 %vm391_vm0, %v355_v57  ;;  %v376_v57 = vld [vmem:[%s5223_s10 + $0x3e0] sm:$0xff] }
  0xe5   : > { %4284 = vmatprep.mubr.msk.f32.mxu0 %vm391_vm0, %v356_v58 }
  0xe8   : > { %4285 = vmatmul.mubr.msk.f32.gmra.mrb[104].mxu0 %vm391_vm0, %v357_v59 }
  0xe9   : > { %4287 = vmatprep.mubr.msk.f32.mxu0 %vm391_vm0, %v358_v60 }
  0xeb   : > { %v4130_v0 = vpop.f32.mrb[0].mxu0 }
  0xec   : > { %v848_v1 = vadd.f32 %v4130_v0, %v5465_v61  ;;  %v842_v2 = vpop.f32.mrb[1].mxu0  ;;  %4288 = vmatmul.mubr.msk.f32.gmra.mrb[106].mxu0 %vm391_vm0, %v359_v62  ;;  %v377_v0 = vld [vmem:[%s5223_s10 + $0x3e8] sm:$0xff] }
  0xed   : > { %v843_v3 = vadd.f32 %v5465_v61, %v842_v2  ;;  %4290 = vmatprep.mubr.msk.f32.mxu0 %vm391_vm0, %v360_v63  ;;  %v378_v2 = vld [vmem:[%s5223_s10 + $0x3f0] sm:$0xff] }
  0xef   : > { %4640 = vtanh.f32 %v843_v3  ;;  %v4133_v6 = vpop.f32.mrb[2].mxu0 }
  0xf0   : > { %4642 = vtanh.f32 %v848_v1  ;;  %v858_v7 = vadd.f32 %v4133_v6, %v5465_v61  ;;  %v852_v8 = vpop.f32.mrb[3].mxu0  ;;  %4291 = vmatmul.mubr.msk.f32.gmra.mrb[108].mxu0 %vm391_vm0, %v361_v4 }
  0xf1   : > { %v853_v9 = vadd.f32 %v5465_v61, %v852_v8  ;;  %4293 = vmatprep.mubr.msk.f32.mxu0 %vm391_vm0, %v362_v5  ;;  %v379_v8 = vld [vmem:[%s5223_s10 + $0x3f8] sm:$0xff] }
  0xf3   : > { %4644 = vtanh.f32 %v853_v9  ;;  %v4136_v12 = vpop.f32.mrb[4].mxu0 }
  0xf4   : > { %4646 = vtanh.f32 %v858_v7  ;;  %v868_v13 = vadd.f32 %v4136_v12, %v5465_v61  ;;  %v862_v14 = vpop.f32.mrb[5].mxu0  ;;  %4294 = vmatmul.mubr.msk.f32.gmra.mrb[110].mxu0 %vm391_vm0, %v363_v10 }
  0xf5   : > { %v863_v15 = vadd.f32 %v5465_v61, %v862_v14  ;;  %4296 = vmatprep.mubr.msk.f32.mxu0 %vm391_vm0, %v364_v11 }
  0xf7   : > { %4648 = vtanh.f32 %v863_v15  ;;  %v4139_v18 = vpop.f32.mrb[6].mxu0 }
  0xf8   : > { %4650 = vtanh.f32 %v868_v13  ;;  %v878_v19 = vadd.f32 %v4139_v18, %v5465_v61  ;;  %v872_v20 = vpop.f32.mrb[7].mxu0  ;;  %4297 = vmatmul.mubr.msk.f32.gmra.mrb[112].mxu0 %vm391_vm0, %v365_v16 }
  0xf9   : > { %v4641_v21 = vpop.eup %4640  ;;  %v873_v22 = vadd.f32 %v5465_v61, %v872_v20  ;;  %4299 = vmatprep.mubr.msk.f32.mxu0 %vm391_vm0, %v366_v17 }
  0xfa   : > { %v4643_v24 = vpop.eup %4642  ;;  %4336 = vmatprep.mubr.msk.f32.mxu1 %vm1624_vm1, %v4641_v21 }
  0xfb   : > { %4652 = vtanh.f32 %v873_v22  ;;  %v4142_v26 = vpop.f32.mrb[8].mxu0  ;;  %4337 = vmatmul.mubr.msk.f32.vlgmr.msra.gmra.mrb[0].mxu1 %vm1624_vm1, %v4643_v24 }
  0xfc   : > { %4654 = vtanh.f32 %v878_v19  ;;  %v888_v27 = vadd.f32 %v4142_v26, %v5465_v61  ;;  %v882_v28 = vpop.f32.mrb[9].mxu0  ;;  %4300 = vmatmul.mubr.msk.f32.gmra.mrb[114].mxu0 %vm391_vm0, %v367_v23 }
  0xfd   : > { %v4645_v29 = vpop.eup %4644  ;;  %v883_v30 = vadd.f32 %v5465_v61, %v882_v28  ;;  %4302 = vmatprep.mubr.msk.f32.mxu0 %vm391_vm0, %v368_v25 }
  0xfe   : > { %v4647_v32 = vpop.eup %4646  ;;  %4339 = vmatprep.mubr.msk.f32.mxu1 %vm1624_vm1, %v4645_v29 }
  0xff   : > { %4656 = vtanh.f32 %v883_v30  ;;  %v4145_v34 = vpop.f32.mrb[10].mxu0  ;;  %4340 = vmatmul.mubr.msk.f32.gmra.mrb[2].mxu1 %vm1624_vm1, %v4647_v32 }
 0x100   : > { %4658 = vtanh.f32 %v888_v27  ;;  %v898_v35 = vadd.f32 %v4145_v34, %v5465_v61  ;;  %v892_v36 = vpop.f32.mrb[11].mxu0  ;;  %4303 = vmatmul.mubr.msk.f32.gmra.mrb[116].mxu0 %vm391_vm0, %v369_v31 }
 0x101   : > { %v4649_v37 = vpop.eup %4648  ;;  %v893_v38 = vadd.f32 %v5465_v61, %v892_v36  ;;  %4305 = vmatprep.mubr.msk.f32.mxu0 %vm391_vm0, %v370_v33 }
 0x102   : > { %v4651_v40 = vpop.eup %4650  ;;  %4342 = vmatprep.mubr.msk.f32.mxu1 %vm1624_vm1, %v4649_v37 }
 0x103   : > { %4660 = vtanh.f32 %v893_v38  ;;  %v4148_v42 = vpop.f32.mrb[12].mxu0  ;;  %4343 = vmatmul.mubr.msk.f32.gmra.mrb[4].mxu1 %vm1624_vm1, %v4651_v40 }
 0x104   : > { %4662 = vtanh.f32 %v898_v35  ;;  %v908_v43 = vadd.f32 %v4148_v42, %v5465_v61  ;;  %v902_v44 = vpop.f32.mrb[13].mxu0  ;;  %4306 = vmatmul.mubr.msk.f32.gmra.mrb[118].mxu0 %vm391_vm0, %v371_v39 }
 0x105   : > { %v4653_v45 = vpop.eup %4652  ;;  %v903_v46 = vadd.f32 %v5465_v61, %v902_v44  ;;  %4308 = vmatprep.mubr.msk.f32.mxu0 %vm391_vm0, %v372_v41 }
 0x106   : > { %v4655_v48 = vpop.eup %4654  ;;  %4345 = vmatprep.mubr.msk.f32.mxu1 %vm1624_vm1, %v4653_v45 }
 0x107   : > { %4664 = vtanh.f32 %v903_v46  ;;  %v4151_v50 = vpop.f32.mrb[14].mxu0  ;;  %4346 = vmatmul.mubr.msk.f32.gmra.mrb[6].mxu1 %vm1624_vm1, %v4655_v48 }
 0x108   : > { %4666 = vtanh.f32 %v908_v43  ;;  %v918_v51 = vadd.f32 %v4151_v50, %v5465_v61  ;;  %v912_v52 = vpop.f32.mrb[15].mxu0  ;;  %4309 = vmatmul.mubr.msk.f32.gmra.mrb[120].mxu0 %vm391_vm0, %v373_v47 }
 0x109   : > { %v4657_v53 = vpop.eup %4656  ;;  %v913_v54 = vadd.f32 %v5465_v61, %v912_v52  ;;  %4311 = vmatprep.mubr.msk.f32.mxu0 %vm391_vm0, %v374_v49 }
 0x10a   : > { %v4659_v56 = vpop.eup %4658  ;;  %4348 = vmatprep.mubr.msk.f32.mxu1 %vm1624_vm1, %v4657_v53 }
 0x10b   : > { %4668 = vtanh.f32 %v913_v54  ;;  %v4154_v58 = vpop.f32.mrb[16].mxu0  ;;  %4349 = vmatmul.mubr.msk.f32.gmra.mrb[8].mxu1 %vm1624_vm1, %v4659_v56 }
 0x10c   : > { %4670 = vtanh.f32 %v918_v51  ;;  %v928_v59 = vadd.f32 %v4154_v58, %v5465_v61  ;;  %v922_v60 = vpop.f32.mrb[17].mxu0  ;;  %4312 = vmatmul.mubr.msk.f32.gmra.mrb[122].mxu0 %vm391_vm0, %v375_v55 }
 0x10d   : > { %v4661_v62 = vpop.eup %4660  ;;  %v923_v63 = vadd.f32 %v5465_v61, %v922_v60  ;;  %4314 = vmatprep.mubr.msk.f32.mxu0 %vm391_vm0, %v376_v57 }
 0x10e   : > { %v4663_v1 = vpop.eup %4662  ;;  %4351 = vmatprep.mubr.msk.f32.mxu1 %vm1624_vm1, %v4661_v62 }
 0x10f   : > { %4672 = vtanh.f32 %v923_v63  ;;  %v4157_v3 = vpop.f32.mrb[18].mxu0  ;;  %4352 = vmatmul.mubr.msk.f32.gmra.mrb[10].mxu1 %vm1624_vm1, %v4663_v1 }
 0x110   : > { %4674 = vtanh.f32 %v928_v59  ;;  %v938_v4 = vadd.f32 %v4157_v3, %v5465_v61  ;;  %v932_v5 = vpop.f32.mrb[19].mxu0  ;;  %4315 = vmatmul.mubr.msk.f32.gmra.mrb[124].mxu0 %vm391_vm0, %v377_v0 }
 0x111   : > { %v4665_v6 = vpop.eup %4664  ;;  %v933_v7 = vadd.f32 %v5465_v61, %v932_v5  ;;  %4317 = vmatprep.mubr.msk.f32.mxu0 %vm391_vm0, %v378_v2 }
 0x112   : > { %v4667_v9 = vpop.eup %4666  ;;  %4354 = vmatprep.mubr.msk.f32.mxu1 %vm1624_vm1, %v4665_v6 }
 0x113   : > { %4676 = vtanh.f32 %v933_v7  ;;  %v4160_v10 = vpop.f32.mrb[20].mxu0  ;;  %4355 = vmatmul.mubr.msk.f32.gmra.mrb[12].mxu1 %vm1624_vm1, %v4667_v9 }
 0x114   : > { %4678 = vtanh.f32 %v938_v4  ;;  %v948_v11 = vadd.f32 %v4160_v10, %v5465_v61  ;;  %v942_v12 = vpop.f32.mrb[21].mxu0  ;;  %4318 = vmatmul.mubr.msk.f32.gmra.mrb[126].mxu0 %vm391_vm0, %v379_v8 }
 0x115   : > { %v4669_v13 = vpop.eup %4668  ;;  %v943_v14 = vadd.f32 %v5465_v61, %v942_v12 }
 0x116   : > { %v4671_v15 = vpop.eup %4670  ;;  %4357 = vmatprep.mubr.msk.f32.mxu1 %vm1624_vm1, %v4669_v13 }
 0x117   : > { %4680 = vtanh.f32 %v943_v14  ;;  %v4163_v16 = vpop.f32.mrb[22].mxu0  ;;  %4358 = vmatmul.mubr.msk.f32.gmra.mrb[14].mxu1 %vm1624_vm1, %v4671_v15 }
 0x118   : > { %4682 = vtanh.f32 %v948_v11  ;;  %v958_v17 = vadd.f32 %v4163_v16, %v5465_v61  ;;  %v952_v18 = vpop.f32.mrb[23].mxu0 }
 0x119   : > { %v4673_v19 = vpop.eup %4672  ;;  %v953_v20 = vadd.f32 %v5465_v61, %v952_v18 }
 0x11a   : > { %v4675_v21 = vpop.eup %4674  ;;  %4360 = vmatprep.mubr.msk.f32.mxu1 %vm1624_vm1, %v4673_v19 }
 0x11b   : > { %4684 = vtanh.f32 %v953_v20  ;;  %v4166_v22 = vpop.f32.mrb[24].mxu0  ;;  %4361 = vmatmul.mubr.msk.f32.gmra.mrb[16].mxu1 %vm1624_vm1, %v4675_v21 }
 0x11c   : > { %4686 = vtanh.f32 %v958_v17  ;;  %v968_v23 = vadd.f32 %v4166_v22, %v5465_v61  ;;  %v962_v24 = vpop.f32.mrb[25].mxu0 }
 0x11d   : > { %v4677_v25 = vpop.eup %4676  ;;  %v963_v26 = vadd.f32 %v5465_v61, %v962_v24 }
 0x11e   : > { %v4679_v27 = vpop.eup %4678  ;;  %4363 = vmatprep.mubr.msk.f32.mxu1 %vm1624_vm1, %v4677_v25 }
 0x11f   : > { %4688 = vtanh.f32 %v963_v26  ;;  %v4169_v28 = vpop.f32.mrb[26].mxu0  ;;  %4364 = vmatmul.mubr.msk.f32.gmra.mrb[18].mxu1 %vm1624_vm1, %v4679_v27 }
 0x120   : > { %4690 = vtanh.f32 %v968_v23  ;;  %v978_v29 = vadd.f32 %v4169_v28, %v5465_v61  ;;  %v972_v30 = vpop.f32.mrb[27].mxu0 }
 0x121   : > { %v4681_v31 = vpop.eup %4680  ;;  %v973_v32 = vadd.f32 %v5465_v61, %v972_v30 }
 0x122   : > { %v4683_v33 = vpop.eup %4682  ;;  %4366 = vmatprep.mubr.msk.f32.mxu1 %vm1624_vm1, %v4681_v31 }
 0x123   : > { %4692 = vtanh.f32 %v973_v32  ;;  %v4172_v34 = vpop.f32.mrb[28].mxu0  ;;  %4367 = vmatmul.mubr.msk.f32.gmra.mrb[20].mxu1 %vm1624_vm1, %v4683_v33 }
 0x124   : > { %4694 = vtanh.f32 %v978_v29  ;;  %v988_v35 = vadd.f32 %v4172_v34, %v5465_v61  ;;  %v982_v36 = vpop.f32.mrb[29].mxu0 }
 0x125   : > { %v4685_v37 = vpop.eup %4684  ;;  %v983_v38 = vadd.f32 %v5465_v61, %v982_v36 }
 0x126   : > { %v4687_v39 = vpop.eup %4686  ;;  %4369 = vmatprep.mubr.msk.f32.mxu1 %vm1624_vm1, %v4685_v37 }
 0x127   : > { %4696 = vtanh.f32 %v983_v38  ;;  %v4175_v40 = vpop.f32.mrb[30].mxu0  ;;  %4370 = vmatmul.mubr.msk.f32.gmra.mrb[22].mxu1 %vm1624_vm1, %v4687_v39 }
 0x128   : > { %4698 = vtanh.f32 %v988_v35  ;;  %v998_v41 = vadd.f32 %v4175_v40, %v5465_v61  ;;  %v992_v42 = vpop.f32.mrb[31].mxu0 }
 0x129   : > { %v4689_v43 = vpop.eup %4688  ;;  %v993_v44 = vadd.f32 %v5465_v61, %v992_v42 }
 0x12a   : > { %v4691_v45 = vpop.eup %4690  ;;  %4372 = vmatprep.mubr.msk.f32.mxu1 %vm1624_vm1, %v4689_v43 }
 0x12b   : > { %4700 = vtanh.f32 %v993_v44  ;;  %v4178_v46 = vpop.f32.mrb[32].mxu0  ;;  %4373 = vmatmul.mubr.msk.f32.gmra.mrb[24].mxu1 %vm1624_vm1, %v4691_v45 }
 0x12c   : > { %4702 = vtanh.f32 %v998_v41  ;;  %v1008_v47 = vadd.f32 %v4178_v46, %v5465_v61  ;;  %v1002_v48 = vpop.f32.mrb[33].mxu0 }
 0x12d   : > { %v4693_v49 = vpop.eup %4692  ;;  %v1003_v50 = vadd.f32 %v5465_v61, %v1002_v48 }
 0x12e   : > { %v4695_v51 = vpop.eup %4694  ;;  %4375 = vmatprep.mubr.msk.f32.mxu1 %vm1624_vm1, %v4693_v49 }
 0x12f   : > { %4704 = vtanh.f32 %v1003_v50  ;;  %v4181_v52 = vpop.f32.mrb[34].mxu0  ;;  %4376 = vmatmul.mubr.msk.f32.gmra.mrb[26].mxu1 %vm1624_vm1, %v4695_v51 }
 0x130   : > { %4706 = vtanh.f32 %v1008_v47  ;;  %v1018_v53 = vadd.f32 %v4181_v52, %v5465_v61  ;;  %v1012_v54 = vpop.f32.mrb[35].mxu0 }
 0x131   : > { %v4697_v55 = vpop.eup %4696  ;;  %v1013_v56 = vadd.f32 %v5465_v61, %v1012_v54 }
 0x132   : > { %v4699_v57 = vpop.eup %4698  ;;  %4378 = vmatprep.mubr.msk.f32.mxu1 %vm1624_vm1, %v4697_v55 }
 0x133   : > { %4708 = vtanh.f32 %v1013_v56  ;;  %v4184_v58 = vpop.f32.mrb[36].mxu0  ;;  %4379 = vmatmul.mubr.msk.f32.gmra.mrb[28].mxu1 %vm1624_vm1, %v4699_v57 }
 0x134   : > { %4710 = vtanh.f32 %v1018_v53  ;;  %v1028_v59 = vadd.f32 %v4184_v58, %v5465_v61  ;;  %v1022_v60 = vpop.f32.mrb[37].mxu0 }
 0x135   : > { %v4701_v62 = vpop.eup %4700  ;;  %v1023_v63 = vadd.f32 %v5465_v61, %v1022_v60 }
 0x136   : > { %v4703_v0 = vpop.eup %4702  ;;  %4381 = vmatprep.mubr.msk.f32.mxu1 %vm1624_vm1, %v4701_v62 }
 0x137   : > { %4712 = vtanh.f32 %v1023_v63  ;;  %v4187_v1 = vpop.f32.mrb[38].mxu0  ;;  %4382 = vmatmul.mubr.msk.f32.gmra.mrb[30].mxu1 %vm1624_vm1, %v4703_v0 }
 0x138   : > { %4714 = vtanh.f32 %v1028_v59  ;;  %v1038_v2 = vadd.f32 %v4187_v1, %v5465_v61  ;;  %v1032_v3 = vpop.f32.mrb[39].mxu0 }
 0x139   : > { %v4705_v4 = vpop.eup %4704  ;;  %v1033_v5 = vadd.f32 %v5465_v61, %v1032_v3 }
 0x13a   : > { %v4707_v6 = vpop.eup %4706  ;;  %4384 = vmatprep.mubr.msk.f32.mxu1 %vm1624_vm1, %v4705_v4 }
 0x13b   : > { %4716 = vtanh.f32 %v1033_v5  ;;  %v4190_v7 = vpop.f32.mrb[40].mxu0  ;;  %4385 = vmatmul.mubr.msk.f32.gmra.mrb[32].mxu1 %vm1624_vm1, %v4707_v6 }
 0x13c   : > { %4718 = vtanh.f32 %v1038_v2  ;;  %v1048_v8 = vadd.f32 %v4190_v7, %v5465_v61  ;;  %v1042_v9 = vpop.f32.mrb[41].mxu0 }
 0x13d   : > { %v4709_v10 = vpop.eup %4708  ;;  %v1043_v11 = vadd.f32 %v5465_v61, %v1042_v9 }
 0x13e   : > { %v4711_v12 = vpop.eup %4710  ;;  %4387 = vmatprep.mubr.msk.f32.mxu1 %vm1624_vm1, %v4709_v10 }
 0x13f   : > { %4720 = vtanh.f32 %v1043_v11  ;;  %v4193_v13 = vpop.f32.mrb[42].mxu0  ;;  %4388 = vmatmul.mubr.msk.f32.gmra.mrb[34].mxu1 %vm1624_vm1, %v4711_v12 }
 0x140   : > { %4722 = vtanh.f32 %v1048_v8  ;;  %v1058_v14 = vadd.f32 %v4193_v13, %v5465_v61  ;;  %v1052_v15 = vpop.f32.mrb[43].mxu0 }
 0x141   : > { %v4713_v16 = vpop.eup %4712  ;;  %v1053_v17 = vadd.f32 %v5465_v61, %v1052_v15 }
 0x142   : > { %v4715_v18 = vpop.eup %4714  ;;  %4390 = vmatprep.mubr.msk.f32.mxu1 %vm1624_vm1, %v4713_v16 }
 0x143   : > { %4724 = vtanh.f32 %v1053_v17  ;;  %v4196_v19 = vpop.f32.mrb[44].mxu0  ;;  %4391 = vmatmul.mubr.msk.f32.gmra.mrb[36].mxu1 %vm1624_vm1, %v4715_v18 }
 0x144   : > { %4726 = vtanh.f32 %v1058_v14  ;;  %v1068_v20 = vadd.f32 %v4196_v19, %v5465_v61  ;;  %v1062_v21 = vpop.f32.mrb[45].mxu0 }
 0x145   : > { %v4717_v22 = vpop.eup %4716  ;;  %v1063_v23 = vadd.f32 %v5465_v61, %v1062_v21 }
 0x146   : > { %v4719_v24 = vpop.eup %4718  ;;  %4393 = vmatprep.mubr.msk.f32.mxu1 %vm1624_vm1, %v4717_v22 }
 0x147   : > { %4728 = vtanh.f32 %v1063_v23  ;;  %v4199_v25 = vpop.f32.mrb[46].mxu0  ;;  %4394 = vmatmul.mubr.msk.f32.gmra.mrb[38].mxu1 %vm1624_vm1, %v4719_v24 }
 0x148   : > { %4730 = vtanh.f32 %v1068_v20  ;;  %v1078_v26 = vadd.f32 %v4199_v25, %v5465_v61  ;;  %v1072_v27 = vpop.f32.mrb[47].mxu0 }
 0x149   : > { %v4721_v28 = vpop.eup %4720  ;;  %v1073_v29 = vadd.f32 %v5465_v61, %v1072_v27 }
 0x14a   : > { %v4723_v30 = vpop.eup %4722  ;;  %4396 = vmatprep.mubr.msk.f32.mxu1 %vm1624_vm1, %v4721_v28 }
 0x14b   : > { %4732 = vtanh.f32 %v1073_v29  ;;  %v4202_v31 = vpop.f32.mrb[48].mxu0  ;;  %4397 = vmatmul.mubr.msk.f32.gmra.mrb[40].mxu1 %vm1624_vm1, %v4723_v30 }
 0x14c   : > { %4734 = vtanh.f32 %v1078_v26  ;;  %v1088_v32 = vadd.f32 %v4202_v31, %v5465_v61  ;;  %v1082_v33 = vpop.f32.mrb[49].mxu0 }
 0x14d   : > { %v4725_v34 = vpop.eup %4724  ;;  %v1083_v35 = vadd.f32 %v5465_v61, %v1082_v33 }
 0x14e   : > { %v4727_v36 = vpop.eup %4726  ;;  %4399 = vmatprep.mubr.msk.f32.mxu1 %vm1624_vm1, %v4725_v34 }
 0x14f   : > { %4736 = vtanh.f32 %v1083_v35  ;;  %v4205_v37 = vpop.f32.mrb[50].mxu0  ;;  %4400 = vmatmul.mubr.msk.f32.gmra.mrb[42].mxu1 %vm1624_vm1, %v4727_v36 }
 0x150   : > { %4738 = vtanh.f32 %v1088_v32  ;;  %v1098_v38 = vadd.f32 %v4205_v37, %v5465_v61  ;;  %v1092_v39 = vpop.f32.mrb[51].mxu0 }
 0x151   : > { %v4729_v40 = vpop.eup %4728  ;;  %v1093_v41 = vadd.f32 %v5465_v61, %v1092_v39 }
 0x152   : > { %v4731_v42 = vpop.eup %4730  ;;  %4402 = vmatprep.mubr.msk.f32.mxu1 %vm1624_vm1, %v4729_v40 }
 0x153   : > { %4740 = vtanh.f32 %v1093_v41  ;;  %v4208_v43 = vpop.f32.mrb[52].mxu0  ;;  %4403 = vmatmul.mubr.msk.f32.gmra.mrb[44].mxu1 %vm1624_vm1, %v4731_v42 }
 0x154   : > { %4742 = vtanh.f32 %v1098_v38  ;;  %v1108_v44 = vadd.f32 %v4208_v43, %v5465_v61  ;;  %v1102_v45 = vpop.f32.mrb[53].mxu0 }
 0x155   : > { %v4733_v46 = vpop.eup %4732  ;;  %v1103_v47 = vadd.f32 %v5465_v61, %v1102_v45 }
 0x156   : > { %v4735_v48 = vpop.eup %4734  ;;  %4405 = vmatprep.mubr.msk.f32.mxu1 %vm1624_vm1, %v4733_v46 }
 0x157   : > { %4744 = vtanh.f32 %v1103_v47  ;;  %v4211_v49 = vpop.f32.mrb[54].mxu0  ;;  %4406 = vmatmul.mubr.msk.f32.gmra.mrb[46].mxu1 %vm1624_vm1, %v4735_v48 }
 0x158   : > { %4746 = vtanh.f32 %v1108_v44  ;;  %v1118_v50 = vadd.f32 %v4211_v49, %v5465_v61  ;;  %v1112_v51 = vpop.f32.mrb[55].mxu0 }
 0x159   : > { %v4737_v52 = vpop.eup %4736  ;;  %v1113_v53 = vadd.f32 %v5465_v61, %v1112_v51 }
 0x15a   : > { %v4739_v54 = vpop.eup %4738  ;;  %4408 = vmatprep.mubr.msk.f32.mxu1 %vm1624_vm1, %v4737_v52 }
 0x15b   : > { %4748 = vtanh.f32 %v1113_v53  ;;  %v4214_v55 = vpop.f32.mrb[56].mxu0  ;;  %4409 = vmatmul.mubr.msk.f32.gmra.mrb[48].mxu1 %vm1624_vm1, %v4739_v54 }
 0x15c   : > { %4750 = vtanh.f32 %v1118_v50  ;;  %v1128_v56 = vadd.f32 %v4214_v55, %v5465_v61  ;;  %v1122_v57 = vpop.f32.mrb[57].mxu0 }
 0x15d   : > { %v4741_v58 = vpop.eup %4740  ;;  %v1123_v59 = vadd.f32 %v5465_v61, %v1122_v57 }
 0x15e   : > { %v4743_v60 = vpop.eup %4742  ;;  %4411 = vmatprep.mubr.msk.f32.mxu1 %vm1624_vm1, %v4741_v58 }
 0x15f   : > { %4752 = vtanh.f32 %v1123_v59  ;;  %v4217_v62 = vpop.f32.mrb[58].mxu0  ;;  %4412 = vmatmul.mubr.msk.f32.gmra.mrb[50].mxu1 %vm1624_vm1, %v4743_v60 }
 0x160   : > { %4754 = vtanh.f32 %v1128_v56  ;;  %v1138_v63 = vadd.f32 %v4217_v62, %v5465_v61  ;;  %v1132_v0 = vpop.f32.mrb[59].mxu0 }
 0x161   : > { %v4745_v1 = vpop.eup %4744  ;;  %v1133_v2 = vadd.f32 %v5465_v61, %v1132_v0 }
 0x162   : > { %v4747_v3 = vpop.eup %4746  ;;  %4414 = vmatprep.mubr.msk.f32.mxu1 %vm1624_vm1, %v4745_v1 }
 0x163   : > { %4756 = vtanh.f32 %v1133_v2  ;;  %v4220_v4 = vpop.f32.mrb[60].mxu0  ;;  %4415 = vmatmul.mubr.msk.f32.gmra.mrb[52].mxu1 %vm1624_vm1, %v4747_v3 }
 0x164   : > { %4758 = vtanh.f32 %v1138_v63  ;;  %v1148_v5 = vadd.f32 %v4220_v4, %v5465_v61  ;;  %v1142_v6 = vpop.f32.mrb[61].mxu0 }
 0x165   : > { %v4749_v7 = vpop.eup %4748  ;;  %v1143_v8 = vadd.f32 %v5465_v61, %v1142_v6 }
 0x166   : > { %v4751_v9 = vpop.eup %4750  ;;  %4417 = vmatprep.mubr.msk.f32.mxu1 %vm1624_vm1, %v4749_v7 }
 0x167   : > { %4760 = vtanh.f32 %v1143_v8  ;;  %v4223_v10 = vpop.f32.mrb[62].mxu0  ;;  %4418 = vmatmul.mubr.msk.f32.gmra.mrb[54].mxu1 %vm1624_vm1, %v4751_v9 }
 0x168   : > { %4762 = vtanh.f32 %v1148_v5  ;;  %v1158_v11 = vadd.f32 %v4223_v10, %v5465_v61  ;;  %v1152_v12 = vpop.f32.mrb[63].mxu0 }
 0x169   : > { %v4753_v13 = vpop.eup %4752  ;;  %v1153_v14 = vadd.f32 %v5465_v61, %v1152_v12 }
 0x16a   : > { %v4755_v15 = vpop.eup %4754  ;;  %4420 = vmatprep.mubr.msk.f32.mxu1 %vm1624_vm1, %v4753_v13 }
 0x16b   : > { %4764 = vtanh.f32 %v1153_v14  ;;  %v4226_v16 = vpop.f32.mrb[64].mxu0  ;;  %4421 = vmatmul.mubr.msk.f32.gmra.mrb[56].mxu1 %vm1624_vm1, %v4755_v15 }
 0x16c   : > { %4766 = vtanh.f32 %v1158_v11  ;;  %v1168_v17 = vadd.f32 %v4226_v16, %v5465_v61  ;;  %v1162_v18 = vpop.f32.mrb[65].mxu0 }
 0x16d   : > { %v4757_v19 = vpop.eup %4756  ;;  %v1163_v20 = vadd.f32 %v5465_v61, %v1162_v18 }
 0x16e   : > { %v4759_v21 = vpop.eup %4758  ;;  %4423 = vmatprep.mubr.msk.f32.mxu1 %vm1624_vm1, %v4757_v19 }
 0x16f   : > { %4768 = vtanh.f32 %v1163_v20  ;;  %v4229_v22 = vpop.f32.mrb[66].mxu0  ;;  %4424 = vmatmul.mubr.msk.f32.gmra.mrb[58].mxu1 %vm1624_vm1, %v4759_v21 }
 0x170   : > { %4770 = vtanh.f32 %v1168_v17  ;;  %v1178_v23 = vadd.f32 %v4229_v22, %v5465_v61  ;;  %v1172_v24 = vpop.f32.mrb[67].mxu0 }
 0x171   : > { %v4761_v25 = vpop.eup %4760  ;;  %v1173_v26 = vadd.f32 %v5465_v61, %v1172_v24 }
 0x172   : > { %v4763_v27 = vpop.eup %4762  ;;  %4426 = vmatprep.mubr.msk.f32.mxu1 %vm1624_vm1, %v4761_v25 }
 0x173   : > { %4772 = vtanh.f32 %v1173_v26  ;;  %v4232_v28 = vpop.f32.mrb[68].mxu0  ;;  %4427 = vmatmul.mubr.msk.f32.gmra.mrb[60].mxu1 %vm1624_vm1, %v4763_v27 }
 0x174   : > { %4774 = vtanh.f32 %v1178_v23  ;;  %v1188_v29 = vadd.f32 %v4232_v28, %v5465_v61  ;;  %v1182_v30 = vpop.f32.mrb[69].mxu0 }
 0x175   : > { %v4765_v31 = vpop.eup %4764  ;;  %v1183_v32 = vadd.f32 %v5465_v61, %v1182_v30 }
 0x176   : > { %v4767_v33 = vpop.eup %4766  ;;  %4429 = vmatprep.mubr.msk.f32.mxu1 %vm1624_vm1, %v4765_v31 }
 0x177   : > { %4776 = vtanh.f32 %v1183_v32  ;;  %v4235_v34 = vpop.f32.mrb[70].mxu0  ;;  %4430 = vmatmul.mubr.msk.f32.gmra.mrb[62].mxu1 %vm1624_vm1, %v4767_v33 }
 0x178   : > { %4778 = vtanh.f32 %v1188_v29  ;;  %v1198_v35 = vadd.f32 %v4235_v34, %v5465_v61  ;;  %v1192_v36 = vpop.f32.mrb[71].mxu0 }
 0x179   : > { %v4769_v37 = vpop.eup %4768  ;;  %v1193_v38 = vadd.f32 %v5465_v61, %v1192_v36 }
 0x17a   : > { %v4771_v39 = vpop.eup %4770  ;;  %4432 = vmatprep.mubr.msk.f32.mxu1 %vm1624_vm1, %v4769_v37 }
 0x17b   : > { %4780 = vtanh.f32 %v1193_v38  ;;  %v4238_v40 = vpop.f32.mrb[72].mxu0  ;;  %4433 = vmatmul.mubr.msk.f32.gmra.mrb[64].mxu1 %vm1624_vm1, %v4771_v39 }
 0x17c   : > { %4782 = vtanh.f32 %v1198_v35  ;;  %v1208_v41 = vadd.f32 %v4238_v40, %v5465_v61  ;;  %v1202_v42 = vpop.f32.mrb[73].mxu0 }
 0x17d   : > { %v4773_v43 = vpop.eup %4772  ;;  %v1203_v44 = vadd.f32 %v5465_v61, %v1202_v42 }
 0x17e   : > { %v4775_v45 = vpop.eup %4774  ;;  %4435 = vmatprep.mubr.msk.f32.mxu1 %vm1624_vm1, %v4773_v43 }
 0x17f   : > { %4784 = vtanh.f32 %v1203_v44  ;;  %v4241_v46 = vpop.f32.mrb[74].mxu0  ;;  %4436 = vmatmul.mubr.msk.f32.gmra.mrb[66].mxu1 %vm1624_vm1, %v4775_v45 }
 0x180   : > { %4786 = vtanh.f32 %v1208_v41  ;;  %v1218_v47 = vadd.f32 %v4241_v46, %v5465_v61  ;;  %v1212_v48 = vpop.f32.mrb[75].mxu0 }
 0x181   : > { %v4777_v49 = vpop.eup %4776  ;;  %v1213_v50 = vadd.f32 %v5465_v61, %v1212_v48 }
 0x182   : > { %v4779_v51 = vpop.eup %4778  ;;  %4438 = vmatprep.mubr.msk.f32.mxu1 %vm1624_vm1, %v4777_v49 }
 0x183   : > { %4788 = vtanh.f32 %v1213_v50  ;;  %v4244_v52 = vpop.f32.mrb[76].mxu0  ;;  %4439 = vmatmul.mubr.msk.f32.gmra.mrb[68].mxu1 %vm1624_vm1, %v4779_v51  ;;  %v5699_v50 = vld [vmem:[%s6462_s3] ss:$0 sm:$0xff] }
 0x184   : > { %4790 = vtanh.f32 %v1218_v47  ;;  %v1228_v53 = vadd.f32 %v4244_v52, %v5465_v61  ;;  %v1222_v54 = vpop.f32.mrb[77].mxu0 }
 0x185   : > { %v4781_v55 = vpop.eup %4780  ;;  %v1223_v56 = vadd.f32 %v5465_v61, %v1222_v54 }
 0x186   : > { %v4783_v57 = vpop.eup %4782  ;;  %4441 = vmatprep.mubr.msk.f32.mxu1 %vm1624_vm1, %v4781_v55 }
 0x187   : > { %4792 = vtanh.f32 %v1223_v56  ;;  %v4247_v58 = vpop.f32.mrb[78].mxu0  ;;  %4442 = vmatmul.mubr.msk.f32.gmra.mrb[70].mxu1 %vm1624_vm1, %v4783_v57 }
 0x188   : > { %4794 = vtanh.f32 %v1228_v53  ;;  %v1238_v59 = vadd.f32 %v4247_v58, %v5465_v61  ;;  %v1232_v60 = vpop.f32.mrb[79].mxu0 }
 0x189   : > { %v4785_v62 = vpop.eup %4784  ;;  %v1233_v63 = vadd.f32 %v5465_v61, %v1232_v60 }
 0x18a   : > { %v4787_v0 = vpop.eup %4786  ;;  %4444 = vmatprep.mubr.msk.f32.mxu1 %vm1624_vm1, %v4785_v62 }
 0x18b   : > { %4796 = vtanh.f32 %v1233_v63  ;;  %v4250_v1 = vpop.f32.mrb[80].mxu0  ;;  %4445 = vmatmul.mubr.msk.f32.gmra.mrb[72].mxu1 %vm1624_vm1, %v4787_v0 }
 0x18c   : > { %4798 = vtanh.f32 %v1238_v59  ;;  %v1248_v2 = vadd.f32 %v4250_v1, %v5465_v61  ;;  %v1242_v3 = vpop.f32.mrb[81].mxu0 }
 0x18d   : > { %v4789_v4 = vpop.eup %4788  ;;  %v1243_v5 = vadd.f32 %v5465_v61, %v1242_v3 }
 0x18e   : > { %v4791_v6 = vpop.eup %4790  ;;  %4447 = vmatprep.mubr.msk.f32.mxu1 %vm1624_vm1, %v4789_v4 }
 0x18f   : > { %4800 = vtanh.f32 %v1243_v5  ;;  %v4253_v7 = vpop.f32.mrb[82].mxu0  ;;  %4448 = vmatmul.mubr.msk.f32.gmra.mrb[74].mxu1 %vm1624_vm1, %v4791_v6 }
 0x190   : > { %4802 = vtanh.f32 %v1248_v2  ;;  %v1258_v8 = vadd.f32 %v4253_v7, %v5465_v61  ;;  %v1252_v9 = vpop.f32.mrb[83].mxu0 }
 0x191   : > { %v4793_v10 = vpop.eup %4792  ;;  %v1253_v11 = vadd.f32 %v5465_v61, %v1252_v9 }
 0x192   : > { %v4795_v12 = vpop.eup %4794  ;;  %4450 = vmatprep.mubr.msk.f32.mxu1 %vm1624_vm1, %v4793_v10 }
 0x193   : > { %4804 = vtanh.f32 %v1253_v11  ;;  %v4256_v13 = vpop.f32.mrb[84].mxu0  ;;  %4451 = vmatmul.mubr.msk.f32.gmra.mrb[76].mxu1 %vm1624_vm1, %v4795_v12 }
 0x194   : > { %4806 = vtanh.f32 %v1258_v8  ;;  %v1268_v14 = vadd.f32 %v4256_v13, %v5465_v61  ;;  %v1262_v15 = vpop.f32.mrb[85].mxu0 }
 0x195   : > { %v4797_v16 = vpop.eup %4796  ;;  %v1263_v17 = vadd.f32 %v5465_v61, %v1262_v15 }
 0x196   : > { %v4799_v18 = vpop.eup %4798  ;;  %4453 = vmatprep.mubr.msk.f32.mxu1 %vm1624_vm1, %v4797_v16 }
 0x197   : > { %4808 = vtanh.f32 %v1263_v17  ;;  %v4259_v19 = vpop.f32.mrb[86].mxu0  ;;  %4454 = vmatmul.mubr.msk.f32.gmra.mrb[78].mxu1 %vm1624_vm1, %v4799_v18 }
 0x198   : > { %4810 = vtanh.f32 %v1268_v14  ;;  %v1278_v20 = vadd.f32 %v4259_v19, %v5465_v61  ;;  %v1272_v21 = vpop.f32.mrb[87].mxu0 }
 0x199   : > { %v4801_v22 = vpop.eup %4800  ;;  %v1273_v23 = vadd.f32 %v5465_v61, %v1272_v21 }
 0x19a   : > { %v4803_v24 = vpop.eup %4802  ;;  %4456 = vmatprep.mubr.msk.f32.mxu1 %vm1624_vm1, %v4801_v22 }
 0x19b   : > { %4812 = vtanh.f32 %v1273_v23  ;;  %v4262_v25 = vpop.f32.mrb[88].mxu0  ;;  %4457 = vmatmul.mubr.msk.f32.gmra.mrb[80].mxu1 %vm1624_vm1, %v4803_v24 }
 0x19c   : > { %4814 = vtanh.f32 %v1278_v20  ;;  %v1288_v26 = vadd.f32 %v4262_v25, %v5465_v61  ;;  %v1282_v27 = vpop.f32.mrb[89].mxu0 }
 0x19d   : > { %v4805_v28 = vpop.eup %4804  ;;  %v1283_v29 = vadd.f32 %v5465_v61, %v1282_v27 }
 0x19e   : > { %v4807_v30 = vpop.eup %4806  ;;  %4459 = vmatprep.mubr.msk.f32.mxu1 %vm1624_vm1, %v4805_v28 }
 0x19f   : > { %4816 = vtanh.f32 %v1283_v29  ;;  %v4265_v31 = vpop.f32.mrb[90].mxu0  ;;  %4460 = vmatmul.mubr.msk.f32.gmra.mrb[82].mxu1 %vm1624_vm1, %v4807_v30 }
 0x1a0   : > { %4818 = vtanh.f32 %v1288_v26  ;;  %v1298_v32 = vadd.f32 %v4265_v31, %v5465_v61  ;;  %v1292_v33 = vpop.f32.mrb[91].mxu0 }
 0x1a1   : > { %v4809_v34 = vpop.eup %4808  ;;  %v1293_v35 = vadd.f32 %v5465_v61, %v1292_v33 }
 0x1a2   : > { %v4811_v36 = vpop.eup %4810  ;;  %4462 = vmatprep.mubr.msk.f32.mxu1 %vm1624_vm1, %v4809_v34 }
 0x1a3   : > { %4820 = vtanh.f32 %v1293_v35  ;;  %v4268_v37 = vpop.f32.mrb[92].mxu0  ;;  %4463 = vmatmul.mubr.msk.f32.gmra.mrb[84].mxu1 %vm1624_vm1, %v4811_v36 }
 0x1a4   : > { %4822 = vtanh.f32 %v1298_v32  ;;  %v1308_v38 = vadd.f32 %v4268_v37, %v5465_v61  ;;  %v1302_v39 = vpop.f32.mrb[93].mxu0 }
 0x1a5   : > { %v4813_v40 = vpop.eup %4812  ;;  %v1303_v41 = vadd.f32 %v5465_v61, %v1302_v39 }
 0x1a6   : > { %v4815_v42 = vpop.eup %4814  ;;  %4465 = vmatprep.mubr.msk.f32.mxu1 %vm1624_vm1, %v4813_v40 }
 0x1a7   : > { %4824 = vtanh.f32 %v1303_v41  ;;  %v4271_v43 = vpop.f32.mrb[94].mxu0  ;;  %4466 = vmatmul.mubr.msk.f32.gmra.mrb[86].mxu1 %vm1624_vm1, %v4815_v42 }
 0x1a8   : > { %4826 = vtanh.f32 %v1308_v38  ;;  %v1318_v44 = vadd.f32 %v4271_v43, %v5465_v61  ;;  %v1312_v45 = vpop.f32.mrb[95].mxu0 }
 0x1a9   : > { %v4817_v46 = vpop.eup %4816  ;;  %v1313_v47 = vadd.f32 %v5465_v61, %v1312_v45 }
 0x1aa   : > { %v4819_v48 = vpop.eup %4818  ;;  %4468 = vmatprep.mubr.msk.f32.mxu1 %vm1624_vm1, %v4817_v46 }
 0x1ab   : > { %4828 = vtanh.f32 %v1313_v47  ;;  %v4274_v49 = vpop.f32.mrb[96].mxu0  ;;  %4469 = vmatmul.mubr.msk.f32.gmra.mrb[88].mxu1 %vm1624_vm1, %v4819_v48 }
 0x1ac   : > { %4830 = vtanh.f32 %v1318_v44  ;;  %v1328_v51 = vadd.f32 %v5699_v50, %v4274_v49  ;;  %v1322_v52 = vpop.f32.mrb[97].mxu0 }
 0x1ad   : > { %v4821_v53 = vpop.eup %4820  ;;  %v1323_v54 = vadd.f32 %v5699_v50, %v1322_v52 }
 0x1ae   : > { %v4823_v61 = vpop.eup %4822  ;;  %4471 = vmatprep.mubr.msk.f32.mxu1 %vm1624_vm1, %v4821_v53 }
 0x1af   : > { %4832 = vtanh.f32 %v1323_v54  ;;  %v4277_v55 = vpop.f32.mrb[98].mxu0  ;;  %4472 = vmatmul.mubr.msk.f32.gmra.mrb[90].mxu1 %vm1624_vm1, %v4823_v61 }
 0x1b0   : > { %4834 = vtanh.f32 %v1328_v51  ;;  %v1338_v56 = vadd.f32 %v5699_v50, %v4277_v55  ;;  %v1332_v57 = vpop.f32.mrb[99].mxu0 }
 0x1b1   : > { %v4825_v58 = vpop.eup %4824  ;;  %v1333_v59 = vadd.f32 %v5699_v50, %v1332_v57 }
 0x1b2   : > { %v4827_v60 = vpop.eup %4826  ;;  %4474 = vmatprep.mubr.msk.f32.mxu1 %vm1624_vm1, %v4825_v58 }
 0x1b3   : > { %4836 = vtanh.f32 %v1333_v59  ;;  %v4280_v62 = vpop.f32.mrb[100].mxu0  ;;  %4475 = vmatmul.mubr.msk.f32.gmra.mrb[92].mxu1 %vm1624_vm1, %v4827_v60 }
 0x1b4   : > { %4838 = vtanh.f32 %v1338_v56  ;;  %v1348_v63 = vadd.f32 %v5699_v50, %v4280_v62  ;;  %v1342_v0 = vpop.f32.mrb[101].mxu0 }
 0x1b5   : > { %v4829_v1 = vpop.eup %4828  ;;  %v1343_v2 = vadd.f32 %v5699_v50, %v1342_v0 }
 0x1b6   : > { %v4831_v3 = vpop.eup %4830  ;;  %4477 = vmatprep.mubr.msk.f32.mxu1 %vm1624_vm1, %v4829_v1 }
 0x1b7   : > { %4840 = vtanh.f32 %v1343_v2  ;;  %v4283_v4 = vpop.f32.mrb[102].mxu0  ;;  %4478 = vmatmul.mubr.msk.f32.gmra.mrb[94].mxu1 %vm1624_vm1, %v4831_v3 }
 0x1b8   : > { %4842 = vtanh.f32 %v1348_v63  ;;  %v1358_v5 = vadd.f32 %v5699_v50, %v4283_v4  ;;  %v1352_v6 = vpop.f32.mrb[103].mxu0 }
 0x1b9   : > { %v4833_v7 = vpop.eup %4832  ;;  %v1353_v8 = vadd.f32 %v5699_v50, %v1352_v6 }
 0x1ba   : > { %v4835_v9 = vpop.eup %4834  ;;  %4480 = vmatprep.mubr.msk.f32.mxu1 %vm1624_vm1, %v4833_v7 }
 0x1bb   : > { %4844 = vtanh.f32 %v1353_v8  ;;  %v4286_v10 = vpop.f32.mrb[104].mxu0  ;;  %4481 = vmatmul.mubr.msk.f32.gmra.mrb[96].mxu1 %vm1624_vm1, %v4835_v9 }
 0x1bc   : > { %4846 = vtanh.f32 %v1358_v5  ;;  %v1368_v11 = vadd.f32 %v5699_v50, %v4286_v10  ;;  %v1362_v12 = vpop.f32.mrb[105].mxu0 }
 0x1bd   : > { %v4837_v13 = vpop.eup %4836  ;;  %v1363_v14 = vadd.f32 %v5699_v50, %v1362_v12 }
 0x1be   : > { %v4839_v15 = vpop.eup %4838  ;;  %4483 = vmatprep.mubr.msk.f32.mxu1 %vm1624_vm1, %v4837_v13 }
 0x1bf   : > { %4848 = vtanh.f32 %v1363_v14  ;;  %v4289_v16 = vpop.f32.mrb[106].mxu0  ;;  %4484 = vmatmul.mubr.msk.f32.gmra.mrb[98].mxu1 %vm1624_vm1, %v4839_v15 }
 0x1c0   : > { %4850 = vtanh.f32 %v1368_v11  ;;  %v1378_v17 = vadd.f32 %v5699_v50, %v4289_v16  ;;  %v1372_v18 = vpop.f32.mrb[107].mxu0 }
 0x1c1   : > { %v4841_v19 = vpop.eup %4840  ;;  %v1373_v20 = vadd.f32 %v5699_v50, %v1372_v18 }
 0x1c2   : > { %v4843_v21 = vpop.eup %4842  ;;  %4486 = vmatprep.mubr.msk.f32.mxu1 %vm1624_vm1, %v4841_v19 }
 0x1c3   : > { %4852 = vtanh.f32 %v1373_v20  ;;  %v4292_v22 = vpop.f32.mrb[108].mxu0  ;;  %4487 = vmatmul.mubr.msk.f32.gmra.mrb[100].mxu1 %vm1624_vm1, %v4843_v21 }
 0x1c4   : > { %4854 = vtanh.f32 %v1378_v17  ;;  %v1388_v23 = vadd.f32 %v5699_v50, %v4292_v22  ;;  %v1382_v24 = vpop.f32.mrb[109].mxu0 }
 0x1c5   : > { %v4845_v25 = vpop.eup %4844  ;;  %v1383_v26 = vadd.f32 %v5699_v50, %v1382_v24 }
 0x1c6   : > { %v4847_v27 = vpop.eup %4846  ;;  %4489 = vmatprep.mubr.msk.f32.mxu1 %vm1624_vm1, %v4845_v25 }
 0x1c7   : > { %4856 = vtanh.f32 %v1383_v26  ;;  %v4295_v28 = vpop.f32.mrb[110].mxu0  ;;  %4490 = vmatmul.mubr.msk.f32.gmra.mrb[102].mxu1 %vm1624_vm1, %v4847_v27 }
 0x1c8   : > { %4858 = vtanh.f32 %v1388_v23  ;;  %v1398_v29 = vadd.f32 %v5699_v50, %v4295_v28  ;;  %v1392_v30 = vpop.f32.mrb[111].mxu0 }
 0x1c9   : > { %v4849_v31 = vpop.eup %4848  ;;  %v1393_v32 = vadd.f32 %v5699_v50, %v1392_v30 }
 0x1ca   : > { %v4851_v33 = vpop.eup %4850  ;;  %4492 = vmatprep.mubr.msk.f32.mxu1 %vm1624_vm1, %v4849_v31 }
 0x1cb   : > { %4860 = vtanh.f32 %v1393_v32  ;;  %v4298_v34 = vpop.f32.mrb[112].mxu0  ;;  %4493 = vmatmul.mubr.msk.f32.gmra.mrb[104].mxu1 %vm1624_vm1, %v4851_v33 }
 0x1cc   : > { %4862 = vtanh.f32 %v1398_v29  ;;  %v1408_v35 = vadd.f32 %v5699_v50, %v4298_v34  ;;  %v1402_v36 = vpop.f32.mrb[113].mxu0 }
 0x1cd   : > { %v4853_v37 = vpop.eup %4852  ;;  %v1403_v38 = vadd.f32 %v5699_v50, %v1402_v36 }
 0x1ce   : > { %v4855_v39 = vpop.eup %4854  ;;  %v5735_v40 = vpop.f32.mrb[0].mxu1  ;;  %4495 = vmatprep.mubr.msk.f32.mxu1 %vm1624_vm1, %v4853_v37 }
 0x1cf   : > { %4864 = vtanh.f32 %v1403_v38  ;;  %v4301_v41 = vpop.f32.mrb[114].mxu0  ;;  %v5738_v42 = vpop.f32.mrb[1].mxu1  ;;  %4496 = vmatmul.mubr.msk.f32.gmra.mrb[106].mxu1 %vm1624_vm1, %v4855_v39 }
 0x1d0   : > { %4866 = vtanh.f32 %v1408_v35  ;;  %v1412_v43 = vpop.f32.mrb[115].mxu0  ;;  %v1418_v45 = vadd.f32 %v5699_v50, %v4301_v41 }
 0x1d1   : > { %v4857_v44 = vpop.eup %4856  ;;  %v1413_v46 = vadd.f32 %v5699_v50, %v1412_v43 }
 0x1d2   : > { %v4859_v47 = vpop.eup %4858  ;;  %v5743_v48 = vpop.f32.mrb[2].mxu1  ;;  %4498 = vmatprep.mubr.msk.f32.mxu1 %vm1624_vm1, %v4857_v44 }
 0x1d3   : > { %v4304_v49 = vpop.f32.mrb[116].mxu0  ;;  %v5746_v51 = vpop.f32.mrb[3].mxu1  ;;  %4499 = vmatmul.mubr.msk.f32.gmra.mrb[108].mxu1 %vm1624_vm1, %v4859_v47  ;;  %4868 = vtanh.f32 %v1413_v46 }
 0x1d4   : > { %v1422_v52 = vpop.f32.mrb[117].mxu0  ;;  %4870 = vtanh.f32 %v1418_v45  ;;  %v1428_v54 = vadd.f32 %v5699_v50, %v4304_v49 }
 0x1d5   : > { %v4861_v53 = vpop.eup %4860  ;;  %v1423_v61 = vadd.f32 %v5699_v50, %v1422_v52 }
 0x1d6   : > { %v4863_v55 = vpop.eup %4862  ;;  %v5751_v56 = vpop.f32.mrb[4].mxu1  ;;  %4501 = vmatprep.mubr.msk.f32.mxu1 %vm1624_vm1, %v4861_v53 }
 0x1d7   : > { %v4307_v57 = vpop.f32.mrb[118].mxu0  ;;  %v5754_v58 = vpop.f32.mrb[5].mxu1  ;;  %4502 = vmatmul.mubr.msk.f32.gmra.mrb[110].mxu1 %vm1624_vm1, %v4863_v55  ;;  %4872 = vtanh.f32 %v1423_v61 }
 0x1d8   : > { %v1432_v59 = vpop.f32.mrb[119].mxu0  ;;  %4874 = vtanh.f32 %v1428_v54  ;;  %v1438_v62 = vadd.f32 %v5699_v50, %v4307_v57 }
 0x1d9   : > { %v4865_v60 = vpop.eup %4864  ;;  %v1433_v63 = vadd.f32 %v5699_v50, %v1432_v59 }
 0x1da   : > { %v4867_v0 = vpop.eup %4866  ;;  %v5759_v1 = vpop.f32.mrb[6].mxu1  ;;  %4504 = vmatprep.mubr.msk.f32.mxu1 %vm1624_vm1, %v4865_v60 }
 0x1db   : > { %v4310_v2 = vpop.f32.mrb[120].mxu0  ;;  %v5762_v3 = vpop.f32.mrb[7].mxu1  ;;  %4505 = vmatmul.mubr.msk.f32.gmra.mrb[112].mxu1 %vm1624_vm1, %v4867_v0  ;;  %4876 = vtanh.f32 %v1433_v63 }
 0x1dc   : > { %v1442_v4 = vpop.f32.mrb[121].mxu0  ;;  %4878 = vtanh.f32 %v1438_v62  ;;  %v1448_v5 = vadd.f32 %v5699_v50, %v4310_v2 }
 0x1dd   : > { %v1443_v6 = vadd.f32 %v5699_v50, %v1442_v4  ;;  %v4869_v7 = vpop.eup %4868 }
 0x1de   : > { %v5767_v8 = vpop.f32.mrb[8].mxu1  ;;  %v4871_v9 = vpop.eup %4870  ;;  %4507 = vmatprep.mubr.msk.f32.mxu1 %vm1624_vm1, %v4869_v7 }
 0x1df   : > { %v4313_v10 = vpop.f32.mrb[122].mxu0  ;;  %v5770_v11 = vpop.f32.mrb[9].mxu1  ;;  %4880 = vtanh.f32 %v1443_v6  ;;  %4508 = vmatmul.mubr.msk.f32.gmra.mrb[114].mxu1 %vm1624_vm1, %v4871_v9 }
 0x1e0   : > { %v1452_v12 = vpop.f32.mrb[123].mxu0  ;;  %4882 = vtanh.f32 %v1448_v5  ;;  %v1458_v13 = vadd.f32 %v5699_v50, %v4313_v10 }
 0x1e1   : > { %v1453_v14 = vadd.f32 %v5699_v50, %v1452_v12  ;;  %v4873_v15 = vpop.eup %4872 }
 0x1e2   : > { %v5775_v16 = vpop.f32.mrb[10].mxu1  ;;  %v4875_v17 = vpop.eup %4874  ;;  %4510 = vmatprep.mubr.msk.f32.mxu1 %vm1624_vm1, %v4873_v15 }
 0x1e3   : > { %v4316_v18 = vpop.f32.mrb[124].mxu0  ;;  %v5778_v19 = vpop.f32.mrb[11].mxu1  ;;  %4884 = vtanh.f32 %v1453_v14  ;;  %4511 = vmatmul.mubr.msk.f32.gmra.mrb[116].mxu1 %vm1624_vm1, %v4875_v17 }
 0x1e4   : > { %v1462_v20 = vpop.f32.mrb[125].mxu0  ;;  %4886 = vtanh.f32 %v1458_v13  ;;  %v1468_v21 = vadd.f32 %v5699_v50, %v4316_v18 }
 0x1e5   : > { %v1463_v22 = vadd.f32 %v5699_v50, %v1462_v20  ;;  %v4877_v23 = vpop.eup %4876 }
 0x1e6   : > { %v5783_v24 = vpop.f32.mrb[12].mxu1  ;;  %v4879_v25 = vpop.eup %4878  ;;  %4513 = vmatprep.mubr.msk.f32.mxu1 %vm1624_vm1, %v4877_v23 }
 0x1e7   : > { %v4319_v26 = vpop.f32.mrb[126].mxu0  ;;  %v5786_v27 = vpop.f32.mrb[13].mxu1  ;;  %4888 = vtanh.f32 %v1463_v22  ;;  %4514 = vmatmul.mubr.msk.f32.gmra.mrb[118].mxu1 %vm1624_vm1, %v4879_v25 }
 0x1e8   : > { %v1472_v28 = vpop.f32.mrb[127].mxu0  ;;  %4890 = vtanh.f32 %v1468_v21  ;;  %v1478_v29 = vadd.f32 %v5699_v50, %v4319_v26  ;;  %v5878_v26 = vld [vmem:[%s6464_s5] ss:$0 sm:$0xff] }
 0x1e9   : > { %v1473_v30 = vadd.f32 %v5699_v50, %v1472_v28  ;;  %v4881_v31 = vpop.eup %4880 }
 0x1ea   : > { %v5791_v32 = vpop.f32.mrb[14].mxu1  ;;  %v4883_v33 = vpop.eup %4882  ;;  %4516 = vmatprep.mubr.msk.f32.mxu1 %vm1624_vm1, %v4881_v31  ;;  %v2076_v31 = vadd.f32 %v5878_v26, %v5738_v42  ;;  %v2111_v42 = vadd.f32 %v5759_v1, %v5878_v26  ;;  %v2131_v1 = vadd.f32 %v5775_v16, %v5878_v26 }
 0x1eb   : > { %v5794_v34 = vpop.f32.mrb[15].mxu1  ;;  %4892 = vtanh.f32 %v1473_v30  ;;  %4517 = vmatmul.mubr.msk.f32.gmra.mrb[120].mxu1 %vm1624_vm1, %v4883_v33  ;;  %v2081_v30 = vadd.f32 %v5735_v40, %v5878_v26  ;;  %v2091_v33 = vadd.f32 %v5743_v48, %v5878_v26  ;;  %v2096_v40 = vadd.f32 %v5878_v26, %v5754_v58 }
 0x1ec   : > { %4894 = vtanh.f32 %v1478_v29  ;;  %v2116_v58 = vadd.f32 %v5878_v26, %v5770_v11  ;;  %v2136_v11 = vadd.f32 %v5878_v26, %v5786_v27  ;;  %v2151_v16 = vadd.f32 %v5791_v32, %v5878_v26 }
 0x1ed   : > { %v4885_v35 = vpop.eup %4884  ;;  %4896 = vtanh.f32 %v2081_v30 }
 0x1ee   : > { %v5797_v36 = vpop.f32.mrb[16].mxu1  ;;  %v4887_v37 = vpop.eup %4886  ;;  %4519 = vmatprep.mubr.msk.f32.mxu1 %vm1624_vm1, %v4885_v35  ;;  %4898 = vtanh.f32 %v2076_v31 }
 0x1ef   : > { %v5800_v38 = vpop.f32.mrb[17].mxu1  ;;  %4520 = vmatmul.mubr.msk.f32.gmra.mrb[122].mxu1 %vm1624_vm1, %v4887_v37  ;;  %v2086_v37 = vadd.f32 %v5878_v26, %v5746_v51  ;;  %4900 = vtanh.f32 %v2091_v33  ;;  %v2106_v51 = vadd.f32 %v5878_v26, %v5762_v3  ;;  %v2126_v3 = vadd.f32 %v5878_v26, %v5778_v19 }
 0x1f0   : > { %v2146_v19 = vadd.f32 %v5878_v26, %v5794_v34  ;;  %v2161_v27 = vadd.f32 %v5797_v36, %v5878_v26  ;;  %v2156_v32 = vadd.f32 %v5878_v26, %v5800_v38 }
 0x1f1   : > { %v4889_v50 = vpop.eup %4888  ;;  %4902 = vtanh.f32 %v2086_v37 }
 0x1f2   : > { %v5803_v39 = vpop.f32.mrb[18].mxu1  ;;  %v4891_v41 = vpop.eup %4890  ;;  %4522 = vmatprep.mubr.msk.f32.mxu1 %vm1624_vm1, %v4889_v50 }
 0x1f3   : > { %v5806_v43 = vpop.f32.mrb[19].mxu1  ;;  %4523 = vmatmul.mubr.msk.f32.gmra.mrb[124].mxu1 %vm1624_vm1, %v4891_v41  ;;  %v2101_v41 = vadd.f32 %v5751_v56, %v5878_v26  ;;  %v2121_v56 = vadd.f32 %v5767_v8, %v5878_v26  ;;  %v2141_v8 = vadd.f32 %v5783_v24, %v5878_v26  ;;  %v2171_v34 = vadd.f32 %v5803_v39, %v5878_v26 }
 0x1f4   : > { %v2166_v36 = vadd.f32 %v5878_v26, %v5806_v43 }
 0x1f5   : > { %v4893_v44 = vpop.eup %4892  ;;  %4904 = vtanh.f32 %v2101_v41 }
 0x1f6   : > { %v5809_v45 = vpop.f32.mrb[20].mxu1  ;;  %v4895_v46 = vpop.eup %4894  ;;  %4525 = vmatprep.mubr.msk.f32.mxu1 %vm1624_vm1, %v4893_v44  ;;  %4906 = vtanh.f32 %v2096_v40 }
 0x1f7   : > { %v5812_v47 = vpop.f32.mrb[21].mxu1  ;;  %4526 = vmatmul.mubr.msk.f32.gmra.mrb[126].mxu1 %vm1624_vm1, %v4895_v46  ;;  %4908 = vtanh.f32 %v2111_v42  ;;  %v5924_v31 = vpop.eup %4896  ;;  %v2181_v38 = vadd.f32 %v5809_v45, %v5878_v26 }
 0x1f8   : > { %4910 = vtanh.f32 %v2106_v51  ;;  %v5930_v37 = vpop.eup %4898  ;;  %v2176_v43 = vadd.f32 %v5878_v26, %v5812_v47 }
 0x1f9   : > { %4912 = vtanh.f32 %v2121_v56  ;;  %v5936_v24 = vpop.eup %4900 }
 0x1fa   : > { %v5815_v49 = vpop.f32.mrb[22].mxu1  ;;  %4914 = vtanh.f32 %v2116_v58 }
 0x1fb   : > { %v5817_v52 = vpop.f32.mrb[23].mxu1  ;;  %4916 = vtanh.f32 %v2131_v1  ;;  %v5940_v40 = vpop.eup %4902  ;;  %v2191_v45 = vadd.f32 %v5815_v49, %v5878_v26 }
 0x1fc   : > { %4918 = vtanh.f32 %v2126_v3  ;;  %v2186_v47 = vadd.f32 %v5878_v26, %v5817_v52 }
 0x1fd   : > { %4920 = vtanh.f32 %v2141_v8 }
 0x1fe   : > { %v5819_v53 = vpop.f32.mrb[24].mxu1  ;;  %4922 = vtanh.f32 %v2136_v11 }
 0x1ff   : > { %v5821_v54 = vpop.f32.mrb[25].mxu1  ;;  %v5944_v42 = vpop.eup %4904  ;;  %4924 = vtanh.f32 %v2151_v16  ;;  %v2201_v49 = vadd.f32 %v5819_v53, %v5878_v26 }
 0x200   : > { %v5950_v56 = vpop.eup %4906  ;;  %4926 = vtanh.f32 %v2146_v19  ;;  %v2196_v52 = vadd.f32 %v5878_v26, %v5821_v54 }
 0x201   : > { %v5956_v1 = vpop.eup %4908  ;;  %4928 = vtanh.f32 %v2161_v27 }
 0x202   : > { %v5823_v61 = vpop.f32.mrb[26].mxu1  ;;  %v5960_v3 = vpop.eup %4910  ;;  %4930 = vtanh.f32 %v2156_v32 }
 0x203   : > { %v5825_v55 = vpop.f32.mrb[27].mxu1  ;;  %v5962_v39 = vpop.eup %4912  ;;  %4932 = vtanh.f32 %v2171_v34  ;;  %v2211_v53 = vadd.f32 %v5823_v61, %v5878_v26 }
 0x204   : > { %v5964_v11 = vpop.eup %4914  ;;  %4934 = vtanh.f32 %v2166_v36  ;;  %v2206_v54 = vadd.f32 %v5878_v26, %v5825_v55 }
 0x205   : > { %v5969_v27 = vpop.eup %4916  ;;  %4936 = vtanh.f32 %v2181_v38 }
 0x206   : > { %v5827_v57 = vpop.f32.mrb[28].mxu1 }
 0x207   : > { %v5829_v59 = vpop.f32.mrb[29].mxu1 }
 0x20a   : > { %v5831_v60 = vpop.f32.mrb[30].mxu1 }
 0x20b   : > { %v5833_v62 = vpop.f32.mrb[31].mxu1 }
 0x20e   : > { %v5835_v63 = vpop.f32.mrb[32].mxu1 }
 0x20f   : > { %v5837_v0 = vpop.f32.mrb[33].mxu1 }
 0x212   : > { %v5839_v2 = vpop.f32.mrb[34].mxu1 }
 0x213   : > { %v5841_v4 = vpop.f32.mrb[35].mxu1 }
 0x216   : > { %v5843_v5 = vpop.f32.mrb[36].mxu1 }
 0x217   : > { %v5845_v6 = vpop.f32.mrb[37].mxu1 }
 0x21a   : > { %v5847_v7 = vpop.f32.mrb[38].mxu1 }
 0x21b   : > { %v5849_v9 = vpop.f32.mrb[39].mxu1 }
 0x21e   : > { %v5851_v10 = vpop.f32.mrb[40].mxu1 }
 0x21f   : > { %v5853_v12 = vpop.f32.mrb[41].mxu1 }
 0x222   : > { %v5855_v13 = vpop.f32.mrb[42].mxu1 }
 0x223   : > { %v5857_v14 = vpop.f32.mrb[43].mxu1 }
 0x226   : > { %v5859_v15 = vpop.f32.mrb[44].mxu1 }
 0x227   : > { %v5861_v17 = vpop.f32.mrb[45].mxu1 }
 0x22a   : > { %v5863_v18 = vpop.f32.mrb[46].mxu1 }
 0x22b   : > { %v5865_v20 = vpop.f32.mrb[47].mxu1 }
 0x22e   : > { %v5867_v21 = vpop.f32.mrb[48].mxu1 }
 0x22f   : > { %v5869_v22 = vpop.f32.mrb[49].mxu1 }
 0x232   : > { %v5871_v23 = vpop.f32.mrb[50].mxu1 }
 0x233   : > { %v5873_v25 = vpop.f32.mrb[51].mxu1 }
 0x236   : > { %v5880_v28 = vpop.f32.mrb[52].mxu1 }
 0x237   : > { %v5882_v29 = vpop.f32.mrb[53].mxu1 }
 0x23a   : > { %v5890_v35 = vpop.f32.mrb[54].mxu1 }
 0x23b   : > { %6466 = vst [vmem:[#allocation2_spill] sm:$0xff] %v5890_v35  ;;  %v5894_v50 = vpop.f32.mrb[55].mxu1 }
 0x23c   : > { %6467 = vst [vmem:[#allocation3_spill] sm:$0xff] %v5894_v50 }
 0x23e   : > { %v5902_v48 = vpop.f32.mrb[56].mxu1 }
 0x23f   : > { %6468 = vst [vmem:[#allocation4_spill] sm:$0xff] %v5902_v48  ;;  %v5906_v44 = vpop.f32.mrb[57].mxu1 }
 0x240   : > { %6469 = vst [vmem:[#allocation5_spill] sm:$0xff] %v5906_v44 }
 0x242   : > { %v5914_v46 = vpop.f32.mrb[58].mxu1 }
 0x243   : > { %6470 = vst [vmem:[#allocation6_spill] sm:$0xff] %v5914_v46  ;;  %v5918_v30 = vpop.f32.mrb[59].mxu1 }
 0x244   : > { %6471 = vst [vmem:[#allocation7_spill] sm:$0xff] %v5918_v30 }
 0x246   : > { %v5928_v33 = vpop.f32.mrb[60].mxu1 }
 0x247   : > { %6472 = vst [vmem:[#allocation8_spill] sm:$0xff] %v5928_v33  ;;  %v5934_v41 = vpop.f32.mrb[61].mxu1 }
 0x248   : > { %6473 = vst [vmem:[#allocation9_spill] sm:$0xff] %v5934_v41 }
 0x24a   : > { %v5948_v51 = vpop.f32.mrb[62].mxu1 }
 0x24b   : > { %6474 = vst [vmem:[#allocation10_spill] sm:$0xff] %v5948_v51  ;;  %v5954_v58 = vpop.f32.mrb[63].mxu1 }
 0x24c   : > { %6475 = vst [vmem:[#allocation11_spill] sm:$0xff] %v5954_v58  ;;  %v5974_v58 = vpop.eup %4918 }
 0x24d   : > { %v5976_v34 = vpop.eup %4920 }
 0x24e   : > { %v4434_v8 = vpop.f32.mrb[64].mxu1  ;;  %v5978_v51 = vpop.eup %4922 }
 0x24f   : > { %v2401_v16 = vadd.f32 %v4434_v8, %v5878_v26  ;;  %v2395_v19 = vpop.f32.mrb[65].mxu1  ;;  %v5983_v41 = vpop.eup %4924 }
 0x250   : > { %v2396_v32 = vadd.f32 %v5878_v26, %v2395_v19  ;;  %v5988_v19 = vpop.eup %4926 }
 0x251   : > { %4938 = vtanh.f32 %v2401_v16 }
 0x252   : > { %4940 = vtanh.f32 %v2396_v32  ;;  %v4437_v36 = vpop.f32.mrb[66].mxu1  ;;  %v5990_v32 = vpop.eup %4928 }
 0x253   : > { %4942 = vtanh.f32 %v2176_v43  ;;  %v2411_v38 = vadd.f32 %v4437_v36, %v5878_v26  ;;  %v2405_v8 = vpop.f32.mrb[67].mxu1  ;;  %v5992_v33 = vpop.eup %4930 }
 0x254   : > { %4944 = vtanh.f32 %v2191_v45  ;;  %v2406_v16 = vadd.f32 %v5878_v26, %v2405_v8  ;;  %v5997_v30 = vpop.eup %4932 }
 0x255   : > { %4946 = vtanh.f32 %v2411_v38  ;;  %v6002_v8 = vpop.eup %4934 }
 0x256   : > { %4948 = vtanh.f32 %v2406_v16  ;;  %v4440_v43 = vpop.f32.mrb[68].mxu1  ;;  %v6004_v16 = vpop.eup %4936 }
 0x257   : > { %4950 = vtanh.f32 %v2186_v47  ;;  %v2421_v45 = vadd.f32 %v4440_v43, %v5878_v26  ;;  %v2415_v36 = vpop.f32.mrb[69].mxu1 }
 0x258   : > { %4952 = vtanh.f32 %v2201_v49  ;;  %v2416_v38 = vadd.f32 %v5878_v26, %v2415_v36 }
 0x259   : > { %4954 = vtanh.f32 %v2421_v45 }
 0x25a   : > { %4956 = vtanh.f32 %v2416_v38  ;;  %v4443_v47 = vpop.f32.mrb[70].mxu1 }
 0x25b   : > { %v4939_v46 = vpop.eup %4938  ;;  %4958 = vtanh.f32 %v2196_v52  ;;  %v2431_v43 = vadd.f32 %v4443_v47, %v5878_v26  ;;  %v2425_v49 = vpop.f32.mrb[71].mxu1 }
 0x25c   : > { %v4941_v44 = vpop.eup %4940  ;;  %4960 = vtanh.f32 %v2211_v53  ;;  %v2426_v61 = vadd.f32 %v5878_v26, %v2425_v49  ;;  %v2843_v36 = vsub.f32 %v4939_v46, %v5924_v31  ;;  %v2221_v53 = vadd.f32 %v5827_v57, %v5878_v26 }
 0x25d   : > { %v6011_v48 = vpop.eup %4942  ;;  %4962 = vtanh.f32 %v2431_v43  ;;  %v2842_v45 = vsub.f32 %v4941_v44, %v5930_v37 }
 0x25e   : > { %v6014_v38 = vpop.eup %4944  ;;  %4964 = vtanh.f32 %v2426_v61  ;;  %v4446_v52 = vpop.f32.mrb[72].mxu1  ;;  %v2907_v55 = vmul.f32 %v2843_v36, %v2843_v36 }
 0x25f   : > { %v4947_v50 = vpop.eup %4946  ;;  %4966 = vtanh.f32 %v2206_v54  ;;  %v2441_v47 = vadd.f32 %v4446_v52, %v5878_v26  ;;  %v2435_v49 = vpop.f32.mrb[73].mxu1  ;;  %v2906_v35 = vmul.f32 %v2842_v45, %v2842_v45  ;;  %v2216_v52 = vadd.f32 %v5878_v26, %v5829_v59 }
 0x260   : > { %v4949_v46 = vpop.eup %4948  ;;  %v2436_v31 = vadd.f32 %v5878_v26, %v2435_v49  ;;  %v2974_v43 = vsel %vm2970_vm2, %v2907_v55, 0.0  ;;  %v2845_v44 = vsub.f32 %v4947_v50, %v5936_v24 }
 0x261   : > { %v6022_v37 = vpop.eup %4950  ;;  %4968 = vtanh.f32 %v2441_v47  ;;  %2975 = vadd.xlane.f32.xlu1 %v2974_v43  ;;  %v2844_v54 = vsub.f32 %v4949_v46, %v5940_v40  ;;  %v2971_v47 = vsel %vm2970_vm2, %v2906_v35, 0.0  ;;  %v2231_v35 = vadd.f32 %v5831_v60, %v5878_v26 }
 0x262   : > { %v6025_v61 = vpop.eup %4952  ;;  %4970 = vtanh.f32 %v2436_v31  ;;  %v4449_v57 = vpop.f32.mrb[74].mxu1  ;;  %v2909_v43 = vmul.f32 %v2845_v44, %v2845_v44 }
 0x263   : > { %v4955_v36 = vpop.eup %4954  ;;  %4972 = vtanh.f32 %v2221_v53  ;;  %v2451_v55 = vadd.f32 %v4449_v57, %v5878_v26  ;;  %v2445_v45 = vpop.f32.mrb[75].mxu1  ;;  %v2908_v49 = vmul.f32 %v2844_v54, %v2844_v54 }
 0x264   : > { %v4957_v50 = vpop.eup %4956  ;;  %v2446_v24 = vadd.f32 %v5878_v26, %v2445_v45  ;;  %v2847_v40 = vsub.f32 %v4955_v36, %v5944_v42 }
 0x265   : > { %v6033_v46 = vpop.eup %4958  ;;  %4974 = vtanh.f32 %v2451_v55  ;;  %2972 = vadd.xlane.f32.xlu1 %v2971_v47  ;;  %v2977_v53 = vsel %vm2970_vm2, %v2908_v49, 0.0  ;;  %v2846_v59 = vsub.f32 %v4957_v50, %v5950_v56  ;;  %v2980_v49 = vsel %vm2970_vm2, %v2909_v43, 0.0 }
 0x266   : > { %v6037_v31 = vpop.eup %4960  ;;  %4976 = vtanh.f32 %v2446_v24  ;;  %v4452_v54 = vpop.f32.mrb[76].mxu1  ;;  %2978 = vadd.xlane.f32.xlu0 %v2977_v53  ;;  %v2911_v56 = vmul.f32 %v2847_v40, %v2847_v40 }
 0x267   : > { %v4963_v57 = vpop.eup %4962  ;;  %4978 = vtanh.f32 %v2216_v52  ;;  %v2461_v42 = vadd.f32 %v4452_v54, %v5878_v26  ;;  %v2455_v44 = vpop.f32.mrb[77].mxu1  ;;  %v2910_v36 = vmul.f32 %v2846_v59, %v2846_v59  ;;  %v2226_v59 = vadd.f32 %v5878_v26, %v5833_v62 }
 0x268   : > { %v4965_v55 = vpop.eup %4964  ;;  %v2456_v45 = vadd.f32 %v5878_v26, %v2455_v44  ;;  %v2849_v50 = vsub.f32 %v4963_v57, %v5956_v1 }
 0x269   : > { %v6045_v24 = vpop.eup %4966  ;;  %4980 = vtanh.f32 %v2461_v42  ;;  %2981 = vadd.xlane.f32.xlu1 %v2980_v49  ;;  %v2983_v52 = vsel %vm2970_vm2, %v2910_v36, 0.0  ;;  %v2848_v60 = vsub.f32 %v4965_v55, %v5960_v3  ;;  %v2986_v42 = vsel %vm2970_vm2, %v2911_v56, 0.0 }
 0x26a   : > { %4982 = vtanh.f32 %v2456_v45  ;;  %v4455_v47 = vpop.f32.mrb[78].mxu1  ;;  %2984 = vadd.xlane.f32.xlu0 %v2983_v52  ;;  %v2913_v44 = vmul.f32 %v2849_v50, %v2849_v50  ;;  %v2241_v49 = vadd.f32 %v5835_v63, %v5878_v26 }
 0x26b   : > { %v4969_v53 = vpop.eup %4968  ;;  %4984 = vtanh.f32 %v2231_v35  ;;  %v2471_v43 = vadd.f32 %v4455_v47, %v5878_v26  ;;  %v2465_v40 = vpop.f32.mrb[79].mxu1  ;;  %v2912_v1 = vmul.f32 %v2848_v60, %v2848_v60 }
 0x26c   : > { %v4971_v54 = vpop.eup %4970  ;;  %v2466_v57 = vadd.f32 %v5878_v26, %v2465_v40  ;;  %v2851_v3 = vsub.f32 %v4969_v53, %v5962_v39  ;;  %v2992_v47 = vsel %vm2970_vm2, %v2913_v44, 0.0 }
 0x26d   : > { %v6055_v36 = vpop.eup %4972  ;;  %4986 = vtanh.f32 %v2471_v43  ;;  %2987 = vadd.xlane.f32.xlu1 %v2986_v42  ;;  %v2989_v35 = vsel %vm2970_vm2, %v2912_v1, 0.0  ;;  %v2850_v62 = vsub.f32 %v4971_v54, %v5964_v11  ;;  %v2236_v54 = vadd.f32 %v5878_v26, %v5837_v0 }
 0x26e   : > { %4988 = vtanh.f32 %v2466_v57  ;;  %v4458_v55 = vpop.f32.mrb[80].mxu1  ;;  %2990 = vadd.xlane.f32.xlu0 %v2989_v35  ;;  %v2915_v53 = vmul.f32 %v2851_v3, %v2851_v3 }
 0x26f   : > { %v4975_v45 = vpop.eup %4974  ;;  %4990 = vtanh.f32 %v2226_v59  ;;  %v2481_v56 = vadd.f32 %v4458_v55, %v5878_v26  ;;  %v2475_v50 = vpop.f32.mrb[81].mxu1  ;;  %v2914_v39 = vmul.f32 %v2850_v62, %v2850_v62 }
 0x270   : > { %v4977_v52 = vpop.eup %4976  ;;  %v2476_v60 = vadd.f32 %v5878_v26, %v2475_v50  ;;  %v2853_v11 = vsub.f32 %v4975_v45, %v5969_v27  ;;  %v2998_v35 = vsel %vm2970_vm2, %v2915_v53, 0.0  ;;  %v2251_v50 = vadd.f32 %v5839_v2, %v5878_v26 }
 0x271   : > { %v6065_v43 = vpop.eup %4978  ;;  %4992 = vtanh.f32 %v2481_v56  ;;  %2993 = vadd.xlane.f32.xlu1 %v2992_v47  ;;  %v2995_v59 = vsel %vm2970_vm2, %v2914_v39, 0.0  ;;  %v2852_v63 = vsub.f32 %v4977_v52, %v5974_v58 }
 0x272   : > { %4994 = vtanh.f32 %v2476_v60  ;;  %v4461_v40 = vpop.f32.mrb[82].mxu1  ;;  %2996 = vadd.xlane.f32.xlu0 %v2995_v59  ;;  %v2917_v62 = vmul.f32 %v2853_v11, %v2853_v11 }
 0x273   : > { %v4981_v1 = vpop.eup %4980  ;;  %4996 = vtanh.f32 %v2241_v49  ;;  %v2491_v57 = vadd.f32 %v4461_v40, %v5878_v26  ;;  %v2485_v42 = vpop.f32.mrb[83].mxu1  ;;  %v2916_v27 = vmul.f32 %v2852_v63, %v2852_v63 }
 0x274   : > { %v4983_v44 = vpop.eup %4982  ;;  %v2486_v3 = vadd.f32 %v5878_v26, %v2485_v42  ;;  %v2855_v58 = vsub.f32 %v4981_v1, %v5976_v34  ;;  %v3004_v53 = vsel %vm2970_vm2, %v2917_v62, 0.0 }
 0x275   : > { %v6075_v55 = vpop.eup %4984  ;;  %4998 = vtanh.f32 %v2491_v57  ;;  %2999 = vadd.xlane.f32.xlu1 %v2998_v35  ;;  %v3001_v45 = vsel %vm2970_vm2, %v2916_v27, 0.0  ;;  %v2854_v0 = vsub.f32 %v4983_v44, %v5978_v51 }
 0x276   : > { %5000 = vtanh.f32 %v2486_v3  ;;  %v4464_v49 = vpop.f32.mrb[84].mxu1  ;;  %3002 = vadd.xlane.f32.xlu0 %v3001_v45  ;;  %v2919_v11 = vmul.f32 %v2855_v58, %v2855_v58 }
 0x277   : > { %v4987_v56 = vpop.eup %4986  ;;  %5002 = vtanh.f32 %v2236_v54  ;;  %v2501_v39 = vadd.f32 %v4464_v49, %v5878_v26  ;;  %v2495_v52 = vpop.f32.mrb[85].mxu1  ;;  %v2918_v34 = vmul.f32 %v2854_v0, %v2854_v0  ;;  %v2246_v54 = vadd.f32 %v5878_v26, %v5841_v4 }
 0x278   : > { %v4989_v60 = vpop.eup %4988  ;;  %v2496_v47 = vadd.f32 %v5878_v26, %v2495_v52  ;;  %v2857_v51 = vsub.f32 %v4987_v56, %v5983_v41  ;;  %v3010_v3 = vsel %vm2970_vm2, %v2919_v11, 0.0  ;;  %v2261_v56 = vadd.f32 %v5843_v5, %v5878_v26 }
 0x279   : > { %v6085_v59 = vpop.eup %4990  ;;  %5004 = vtanh.f32 %v2501_v39  ;;  %3005 = vadd.xlane.f32.xlu1 %v3004_v53  ;;  %v3007_v63 = vsel %vm2970_vm2, %v2918_v34, 0.0  ;;  %v2856_v2 = vsub.f32 %v4989_v60, %v5988_v19 }
 0x27a   : > { %5006 = vtanh.f32 %v2496_v47  ;;  %v4467_v40 = vpop.f32.mrb[86].mxu1  ;;  %3008 = vadd.xlane.f32.xlu0 %v3007_v63  ;;  %v2921_v35 = vmul.f32 %v2857_v51, %v2857_v51 }
 0x27b   : > { %v4993_v1 = vpop.eup %4992  ;;  %5008 = vtanh.f32 %v2251_v50  ;;  %v2511_v57 = vadd.f32 %v4467_v40, %v5878_v26  ;;  %v2505_v42 = vpop.f32.mrb[87].mxu1  ;;  %v2920_v41 = vmul.f32 %v2856_v2, %v2856_v2  ;;  %v2271_v2 = vadd.f32 %v5847_v7, %v5878_v26 }
 0x27c   : > { %v4995_v27 = vpop.eup %4994  ;;  %v2506_v44 = vadd.f32 %v5878_v26, %v2505_v42  ;;  %v2859_v19 = vsub.f32 %v4993_v1, %v5990_v32  ;;  %v2256_v32 = vadd.f32 %v5878_v26, %v5845_v6 }
 0x27d   : > { %v6095_v62 = vpop.eup %4996  ;;  %5010 = vtanh.f32 %v2511_v57  ;;  %3011 = vadd.xlane.f32.xlu1 %v3010_v3  ;;  %v3013_v58 = vsel %vm2970_vm2, %v2920_v41, 0.0  ;;  %v2858_v4 = vsub.f32 %v4995_v27, %v5992_v33  ;;  %v3016_v33 = vsel %vm2970_vm2, %v2921_v35, 0.0 }
 0x27e   : > { %5012 = vtanh.f32 %v2506_v44  ;;  %v4470_v45 = vpop.f32.mrb[88].mxu1  ;;  %3014 = vadd.xlane.f32.xlu0 %v3013_v58  ;;  %v2923_v0 = vmul.f32 %v2859_v19, %v2859_v19  ;;  %v2266_v19 = vadd.f32 %v5878_v26, %v5849_v9 }
 0x27f   : > { %v4999_v49 = vpop.eup %4998  ;;  %5014 = vtanh.f32 %v2246_v54  ;;  %v2521_v50 = vadd.f32 %v4470_v45, %v5878_v26  ;;  %v2515_v39 = vpop.f32.mrb[89].mxu1  ;;  %v2922_v5 = vmul.f32 %v2858_v4, %v2858_v4  ;;  %v2281_v45 = vadd.f32 %v5851_v10, %v5878_v26 }
 0x280   : > { %v5001_v52 = vpop.eup %5000  ;;  %v2516_v34 = vadd.f32 %v5878_v26, %v2515_v39  ;;  %v3022_v60 = vsel %vm2970_vm2, %v2923_v0, 0.0  ;;  %v2861_v47 = vsub.f32 %v4999_v49, %v5997_v30 }
 0x281   : > { %v6108_v53 = vpop.eup %5002  ;;  %5016 = vtanh.f32 %v2521_v50  ;;  %3017 = vadd.xlane.f32.xlu1 %v3016_v33  ;;  %v2860_v11 = vsub.f32 %v5001_v52, %v6002_v8  ;;  %v3019_v41 = vsel %vm2970_vm2, %v2922_v5, 0.0 }
 0x282   : > { %5018 = vtanh.f32 %v2516_v34  ;;  %v4473_v6 = vpop.f32.mrb[90].mxu1  ;;  %3023 = vadd.xlane.f32.xlu0 %v3022_v60  ;;  %v2925_v51 = vmul.f32 %v2861_v47, %v2861_v47  ;;  %v2276_v34 = vadd.f32 %v5878_v26, %v5853_v12 }
 0x283   : > { %v5005_v63 = vpop.eup %5004  ;;  %5020 = vtanh.f32 %v2261_v56  ;;  %v2531_v40 = vadd.f32 %v4473_v6, %v5878_v26  ;;  %v2525_v1 = vpop.f32.mrb[91].mxu1  ;;  %v2924_v27 = vmul.f32 %v2860_v11, %v2860_v11 }
 0x284   : > { %v5007_v30 = vpop.eup %5006  ;;  %5022 = vtanh.f32 %v2256_v32  ;;  %v2526_v54 = vadd.f32 %v5878_v26, %v2525_v1  ;;  %v3028_v57 = vsel %vm2970_vm2, %v2925_v51, 0.0  ;;  %v2863_v8 = vsub.f32 %v5005_v63, %v6004_v16 }
 0x285   : > { %v6117_v42 = vpop.eup %5008  ;;  %5024 = vtanh.f32 %v2531_v40  ;;  %3029 = vadd.xlane.f32.xlu1 %v3028_v57  ;;  %v2862_v7 = vsub.f32 %v5007_v30, %v6011_v48  ;;  %v3025_v32 = vsel %vm2970_vm2, %v2924_v27, 0.0 }
 0x286   : > { %5026 = vtanh.f32 %v2526_v54  ;;  %v4476_v44 = vpop.f32.mrb[92].mxu1  ;;  %3020 = vadd.xlane.f32.xlu0 %v3019_v41  ;;  %v2927_v3 = vmul.f32 %v2863_v8, %v2863_v8  ;;  %v2286_v8 = vadd.f32 %v5878_v26, %v5857_v14 }
 0x287   : > { %v5011_v35 = vpop.eup %5010  ;;  %5028 = vtanh.f32 %v2271_v2  ;;  %v2541_v16 = vadd.f32 %v4476_v44, %v5878_v26  ;;  %v2535_v58 = vpop.f32.mrb[93].mxu1  ;;  %v2926_v9 = vmul.f32 %v2862_v7, %v2862_v7 }
 0x288   : > { %v5013_v4 = vpop.eup %5012  ;;  %v2536_v0 = vadd.f32 %v5878_v26, %v2535_v58  ;;  %v3034_v48 = vsel %vm2970_vm2, %v2927_v3, 0.0  ;;  %v2865_v49 = vsub.f32 %v5011_v35, %v6014_v38 }
 0x289   : > { %v6129_v56 = vpop.eup %5014  ;;  %5030 = vtanh.f32 %v2541_v16  ;;  %3035 = vadd.xlane.f32.xlu1 %v3034_v48  ;;  %v2864_v50 = vsub.f32 %v5013_v4, %v6022_v37  ;;  %v3031_v6 = vsel %vm2970_vm2, %v2926_v9, 0.0  ;;  %v2301_v16 = vadd.f32 %v5859_v15, %v5878_v26 }
 0x28a   : > { %5032 = vtanh.f32 %v2536_v0  ;;  %v4479_v39 = vpop.f32.mrb[94].mxu1  ;;  %3026 = vadd.xlane.f32.xlu0 %v3025_v32  ;;  %v2929_v52 = vmul.f32 %v2865_v49, %v2865_v49 }
 0x28b   : > { %v5017_v10 = vpop.eup %5016  ;;  %5034 = vtanh.f32 %v2266_v19  ;;  %v2551_v38 = vadd.f32 %v4479_v39, %v5878_v26  ;;  %v2545_v33 = vpop.f32.mrb[95].mxu1  ;;  %v2928_v51 = vmul.f32 %v2864_v50, %v2864_v50 }
 0x28c   : > { %v5019_v60 = vpop.eup %5018  ;;  %5036 = vtanh.f32 %v2281_v45  ;;  %v2546_v47 = vadd.f32 %v5878_v26, %v2545_v33  ;;  %v3040_v5 = vsel %vm2970_vm2, %v2929_v52, 0.0  ;;  %v2867_v37 = vsub.f32 %v5017_v10, %v6025_v61 }
 0x28d   : > { %v6139_v11 = vpop.eup %5020  ;;  %5038 = vtanh.f32 %v2551_v38  ;;  %3041 = vadd.xlane.f32.xlu1 %v3040_v5  ;;  %v2866_v12 = vsub.f32 %v5019_v60, %v6033_v46  ;;  %v2291_v61 = vadd.f32 %v5855_v13, %v5878_v26  ;;  %v3037_v44 = vsel %vm2970_vm2, %v2928_v51, 0.0 }
 0x28e   : > { %v6143_v63 = vpop.eup %5022  ;;  %5040 = vtanh.f32 %v2546_v47  ;;  %v4482_v2 = vpop.f32.mrb[96].mxu1  ;;  %3032 = vadd.xlane.f32.xlu0 %v3031_v6  ;;  %v2931_v40 = vmul.f32 %v2867_v37, %v2867_v37  ;;  %v2311_v33 = vadd.f32 %v5863_v18, %v5878_v26 }
 0x28f   : > { %v5025_v1 = vpop.eup %5024  ;;  %5042 = vtanh.f32 %v2276_v34  ;;  %v2561_v30 = vadd.f32 %v4482_v2, %v5878_v26  ;;  %v2555_v54 = vpop.f32.mrb[97].mxu1  ;;  %v2930_v13 = vmul.f32 %v2866_v12, %v2866_v12  ;;  %v2306_v2 = vadd.f32 %v5878_v26, %v5865_v20 }
 0x290   : > { %v5027_v57 = vpop.eup %5026  ;;  %v2556_v46 = vadd.f32 %v5878_v26, %v2555_v54  ;;  %v3046_v41 = vsel %vm2970_vm2, %v2931_v40, 0.0  ;;  %v2869_v27 = vsub.f32 %v5025_v1, %v6037_v31 }
 0x291   : > { %v6153_v7 = vpop.eup %5028  ;;  %5044 = vtanh.f32 %v2561_v30  ;;  %3047 = vadd.xlane.f32.xlu1 %v3046_v41  ;;  %v2868_v3 = vsub.f32 %v5027_v57, %v6045_v24  ;;  %v3043_v49 = vsel %vm2970_vm2, %v2930_v13, 0.0 }
 0x292   : > { %5046 = vtanh.f32 %v2556_v46  ;;  %v4485_v35 = vpop.f32.mrb[98].mxu1  ;;  %3038 = vadd.xlane.f32.xlu0 %v3037_v44  ;;  %v2933_v19 = vmul.f32 %v2869_v27, %v2869_v27 }
 0x293   : > { %v5031_v14 = vpop.eup %5030  ;;  %5048 = vtanh.f32 %v2291_v61  ;;  %v2571_v31 = vadd.f32 %v4485_v35, %v5878_v26  ;;  %v2565_v58 = vpop.f32.mrb[99].mxu1  ;;  %v2932_v32 = vmul.f32 %v2868_v3, %v2868_v3 }
 0x294   : > { %v5033_v4 = vpop.eup %5032  ;;  %5050 = vtanh.f32 %v2286_v8  ;;  %v2566_v45 = vadd.f32 %v5878_v26, %v2565_v58  ;;  %v3052_v0 = vsel %vm2970_vm2, %v2933_v19, 0.0  ;;  %v2871_v24 = vsub.f32 %v5031_v14, %v6055_v36 }
 0x295   : > { %v6163_v48 = vpop.eup %5034  ;;  %5052 = vtanh.f32 %v2571_v31  ;;  %3053 = vadd.xlane.f32.xlu1 %v3052_v0  ;;  %v2870_v15 = vsub.f32 %v5033_v4, %v6065_v43  ;;  %v2296_v36 = vadd.f32 %v5878_v26, %v5861_v17  ;;  %v3049_v37 = vsel %vm2970_vm2, %v2932_v32, 0.0 }
 0x296   : > { %v6167_v9 = vpop.eup %5036  ;;  %5054 = vtanh.f32 %v2566_v45  ;;  %v4488_v50 = vpop.f32.mrb[100].mxu1  ;;  %3044 = vadd.xlane.f32.xlu0 %v3043_v49  ;;  %v2935_v39 = vmul.f32 %v2871_v24, %v2871_v24  ;;  %v2316_v19 = vadd.f32 %v5878_v26, %v5869_v22  ;;  %v2331_v24 = vadd.f32 %v5871_v23, %v5878_v26 }
 0x297   : > { %v5039_v52 = vpop.eup %5038  ;;  %5056 = vtanh.f32 %v2301_v16  ;;  %v2581_v10 = vadd.f32 %v4488_v50, %v5878_v26  ;;  %v2575_v34 = vpop.f32.mrb[101].mxu1  ;;  %v2934_v17 = vmul.f32 %v2870_v15, %v2870_v15 }
 0x298   : > { %v5041_v38 = vpop.eup %5040  ;;  %v2576_v43 = vadd.f32 %v5878_v26, %v2575_v34  ;;  %v3058_v60 = vsel %vm2970_vm2, %v2935_v39, 0.0  ;;  %v2873_v47 = vsub.f32 %v5039_v52, %v6075_v55 }
 0x299   : > { %v6177_v5 = vpop.eup %5042  ;;  %5058 = vtanh.f32 %v2581_v10  ;;  %3059 = vadd.xlane.f32.xlu1 %v3058_v60  ;;  %v2872_v6 = vsub.f32 %v5041_v38, %v6085_v59  ;;  %v3055_v57 = vsel %vm2970_vm2, %v2934_v17, 0.0 }
 0x29a   : > { %5060 = vtanh.f32 %v2576_v43  ;;  %v4491_v51 = vpop.f32.mrb[102].mxu1  ;;  %3050 = vadd.xlane.f32.xlu0 %v3049_v37  ;;  %v2937_v12 = vmul.f32 %v2873_v47, %v2873_v47  ;;  %v2341_v37 = vadd.f32 %v5880_v28, %v5878_v26 }
 0x29b   : > { %v5045_v18 = vpop.eup %5044  ;;  %5062 = vtanh.f32 %v2296_v36  ;;  %v2591_v55 = vadd.f32 %v4491_v51, %v5878_v26  ;;  %v2585_v40 = vpop.f32.mrb[103].mxu1  ;;  %v2936_v8 = vmul.f32 %v2872_v6, %v2872_v6 }
 0x29c   : > { %v5047_v1 = vpop.eup %5046  ;;  %5064 = vtanh.f32 %v2311_v33  ;;  %v2586_v61 = vadd.f32 %v5878_v26, %v2585_v40  ;;  %v3064_v30 = vsel %vm2970_vm2, %v2937_v12, 0.0  ;;  %v2875_v59 = vsub.f32 %v5045_v18, %v6095_v62 }
 0x29d   : > { %v6187_v54 = vpop.eup %5048  ;;  %5066 = vtanh.f32 %v2591_v55  ;;  %3065 = vadd.xlane.f32.xlu1 %v3064_v30  ;;  %v2874_v20 = vsub.f32 %v5047_v1, %v6108_v53  ;;  %v2321_v62 = vadd.f32 %v5867_v21, %v5878_v26  ;;  %v3061_v58 = vsel %vm2970_vm2, %v2936_v8, 0.0 }
 0x29e   : > { %v6191_v46 = vpop.eup %5050  ;;  %5068 = vtanh.f32 %v2586_v61  ;;  %v4494_v41 = vpop.f32.mrb[104].mxu1  ;;  %3056 = vadd.xlane.f32.xlu0 %v3055_v57  ;;  %v2939_v27 = vmul.f32 %v2875_v59, %v2875_v59  ;;  %v2336_v40 = vadd.f32 %v5878_v26, %v5882_v29 }
 0x29f   : > { %v5053_v44 = vpop.eup %5052  ;;  %5070 = vtanh.f32 %v2306_v2  ;;  %v2601_v13 = vadd.f32 %v4494_v41, %v5878_v26  ;;  %v2595_v3 = vpop.f32.mrb[105].mxu1  ;;  %v2938_v21 = vmul.f32 %v2874_v20, %v2874_v20 }
 0x2a0   : > { %v5055_v35 = vpop.eup %5054  ;;  %v2596_v53 = vadd.f32 %v5878_v26, %v2595_v3  ;;  %v3070_v14 = vsel %vm2970_vm2, %v2939_v27, 0.0  ;;  %v2877_v16 = vsub.f32 %v5053_v44, %v6117_v42 }
 0x2a1   : > { %v6201_v31 = vpop.eup %5056  ;;  %5072 = vtanh.f32 %v2601_v13  ;;  %3071 = vadd.xlane.f32.xlu1 %v3070_v14  ;;  %v2876_v4 = vsub.f32 %v5055_v35, %v6129_v56  ;;  %v3067_v52 = vsel %vm2970_vm2, %v2938_v21, 0.0 }
 0x2a2   : > { %5074 = vtanh.f32 %v2596_v53  ;;  %v4497_v45 = vpop.f32.mrb[106].mxu1  ;;  %3062 = vadd.xlane.f32.xlu0 %v3061_v58  ;;  %v2941_v0 = vmul.f32 %v2877_v16, %v2877_v16 }
 0x2a3   : > { %v5059_v22 = vpop.eup %5058  ;;  %5076 = vtanh.f32 %v2321_v62  ;;  %v2611_v42 = vadd.f32 %v4497_v45, %v5878_v26  ;;  %v2605_v49 = vpop.f32.mrb[107].mxu1  ;;  %v2940_v36 = vmul.f32 %v2876_v4, %v2876_v4  ;;  %v6476_v62 = vld [vmem:[#allocation2_spill] sm:$0xff] }
 0x2a4   : > { %v5061_v32 = vpop.eup %5060  ;;  %5078 = vtanh.f32 %v2316_v19  ;;  %v2606_v15 = vadd.f32 %v5878_v26, %v2605_v49  ;;  %v3076_v50 = vsel %vm2970_vm2, %v2941_v0, 0.0  ;;  %v2879_v56 = vsub.f32 %v5059_v22, %v6139_v11  ;;  %v6477_v19 = vld [vmem:[#allocation3_spill] sm:$0xff] }
 0x2a5   : > { %v6211_v39 = vpop.eup %5062  ;;  %5080 = vtanh.f32 %v2611_v42  ;;  %3077 = vadd.xlane.f32.xlu1 %v3076_v50  ;;  %v2878_v23 = vsub.f32 %v5061_v32, %v6143_v63  ;;  %v2326_v11 = vadd.f32 %v5878_v26, %v5873_v25  ;;  %v3073_v12 = vsel %vm2970_vm2, %v2940_v36, 0.0 }
 0x2a6   : > { %v6215_v10 = vpop.eup %5064  ;;  %5082 = vtanh.f32 %v2606_v15  ;;  %v4500_v34 = vpop.f32.mrb[108].mxu1  ;;  %3068 = vadd.xlane.f32.xlu0 %v3067_v52  ;;  %v2943_v38 = vmul.f32 %v2879_v56, %v2879_v56 }
 0x2a7   : > { %v5067_v33 = vpop.eup %5066  ;;  %5084 = vtanh.f32 %v2331_v24  ;;  %v2621_v43 = vadd.f32 %v4500_v34, %v5878_v26  ;;  %v2615_v60 = vpop.f32.mrb[109].mxu1  ;;  %v2942_v25 = vmul.f32 %v2878_v23, %v2878_v23 }
 0x2a8   : > { %v5069_v47 = vpop.eup %5068  ;;  %v2616_v63 = vadd.f32 %v5878_v26, %v2615_v60  ;;  %v3082_v17 = vsel %vm2970_vm2, %v2943_v38, 0.0  ;;  %v2881_v6 = vsub.f32 %v5067_v33, %v6153_v7 }
 0x2a9   : > { %v6225_v51 = vpop.eup %5070  ;;  %5086 = vtanh.f32 %v2621_v43  ;;  %3083 = vadd.xlane.f32.xlu1 %v3082_v17  ;;  %v2880_v18 = vsub.f32 %v5069_v47, %v6163_v48  ;;  %v3079_v8 = vsel %vm2970_vm2, %v2942_v25, 0.0  ;;  %v6479_v47 = vld [vmem:[#allocation5_spill] sm:$0xff] }
 0x2aa   : > { %5088 = vtanh.f32 %v2616_v63  ;;  %v4503_v2 = vpop.f32.mrb[110].mxu1  ;;  %3074 = vadd.xlane.f32.xlu0 %v3073_v12  ;;  %v2945_v55 = vmul.f32 %v2881_v6, %v2881_v6 }
 0x2ab   : > { %v5073_v28 = vpop.eup %5072  ;;  %5090 = vtanh.f32 %v2326_v11  ;;  %v2631_v7 = vadd.f32 %v4503_v2, %v5878_v26  ;;  %v2625_v1 = vpop.f32.mrb[111].mxu1  ;;  %v2944_v20 = vmul.f32 %v2880_v18, %v2880_v18  ;;  %v6478_v11 = vld [vmem:[#allocation4_spill] sm:$0xff] }
 0x2ac   : > { %v5075_v61 = vpop.eup %5074  ;;  %5092 = vtanh.f32 %v2341_v37  ;;  %v2626_v30 = vadd.f32 %v5878_v26, %v2625_v1  ;;  %v3088_v59 = vsel %vm2970_vm2, %v2945_v55, 0.0  ;;  %v2883_v48 = vsub.f32 %v5073_v28, %v6167_v9  ;;  %v6244_v9 = vld [vmem:[%s6464_s5] ss:$0 sm:$0xff] }
 0x2ad   : > { %v6235_v57 = vpop.eup %5076  ;;  %5094 = vtanh.f32 %v2631_v7  ;;  %3089 = vadd.xlane.f32.xlu1 %v3088_v59  ;;  %v2882_v29 = vsub.f32 %v5075_v61, %v6177_v5  ;;  %v2351_v13 = vadd.f32 %v6244_v9, %v6476_v62  ;;  %v2346_v53 = vadd.f32 %v6244_v9, %v6477_v19  ;;  %v6480_v1 = vld [vmem:[#allocation6_spill] sm:$0xff] }
 0x2ae   : > { %v6239_v41 = vpop.eup %5078  ;;  %5096 = vtanh.f32 %v2626_v30  ;;  %v4506_v27 = vpop.f32.mrb[112].mxu1  ;;  %3080 = vadd.xlane.f32.xlu0 %v3079_v8  ;;  %v2947_v44 = vmul.f32 %v2883_v48, %v2883_v48  ;;  %v3085_v4 = vsel %vm2970_vm2, %v2944_v20, 0.0  ;;  %v2361_v43 = vadd.f32 %v6244_v9, %v6478_v11 }
 0x2af   : > { %v5081_v26 = vpop.eup %5080  ;;  %5098 = vtanh.f32 %v2336_v40  ;;  %v2641_v3 = vadd.f32 %v6244_v9, %v4506_v27  ;;  %v2635_v35 = vpop.f32.mrb[113].mxu1  ;;  %v2946_v45 = vmul.f32 %v2882_v29, %v2882_v29  ;;  %v2356_v37 = vadd.f32 %v6244_v9, %v6479_v47 }
 0x2b0   : > { %v5083_v5 = vpop.eup %5082  ;;  %v2636_v14 = vadd.f32 %v6244_v9, %v2635_v35  ;;  %v3094_v16 = vsel %vm2970_vm2, %v2947_v44, 0.0  ;;  %v2885_v58 = vsub.f32 %v5081_v26, %v6187_v54 }
 0x2b1   : > { %v6254_v21 = vpop.eup %5084  ;;  %5100 = vtanh.f32 %v2641_v3  ;;  %3095 = vadd.xlane.f32.xlu1 %v3094_v16  ;;  %v2884_v0 = vsub.f32 %v5083_v5, %v6191_v46  ;;  %v3091_v46 = vsel %vm2970_vm2, %v2946_v45, 0.0 }
 0x2b2   : > { %5102 = vtanh.f32 %v2636_v14  ;;  %3086 = vadd.xlane.f32.xlu0 %v3085_v4  ;;  %v2949_v22 = vmul.f32 %v2885_v58, %v2885_v58  ;;  %v4509_v42 = vpop.f32.mrb[114].mxu1 }
 0x2b3   : > { %v5087_v24 = vpop.eup %5086  ;;  %5104 = vtanh.f32 %v2351_v13  ;;  %v2651_v32 = vadd.f32 %v6244_v9, %v4509_v42  ;;  %v2645_v54 = vpop.f32.mrb[115].mxu1  ;;  %v2948_v36 = vmul.f32 %v2884_v0, %v2884_v0  ;;  %v6481_v13 = vld [vmem:[#allocation7_spill] sm:$0xff] }
 0x2b4   : > { %v5089_v49 = vpop.eup %5088  ;;  %5106 = vtanh.f32 %v2346_v53  ;;  %v3100_v15 = vsel %vm2970_vm2, %v2949_v22, 0.0  ;;  %v2887_v50 = vsub.f32 %v5087_v24, %v6201_v31  ;;  %v2646_v52 = vadd.f32 %v6244_v9, %v2645_v54  ;;  %v6482_v53 = vld [vmem:[#allocation8_spill] sm:$0xff]  ;;  %v6483_v24 = vld [vmem:[#allocation9_spill] sm:$0xff] }
 0x2b5   : > { %v6261_v56 = vpop.eup %5090  ;;  %3101 = vadd.xlane.f32.xlu1 %v3100_v15  ;;  %v2886_v23 = vsub.f32 %v5089_v49, %v6211_v39  ;;  %5108 = vtanh.f32 %v2651_v32  ;;  %v3097_v18 = vsel %vm2970_vm2, %v2948_v36, 0.0  ;;  %v2376_v42 = vadd.f32 %v6244_v9, %v6483_v24 }
 0x2b6   : > { %v6266_v34 = vpop.eup %5092  ;;  %3092 = vadd.xlane.f32.xlu0 %v3091_v46  ;;  %v2951_v38 = vmul.f32 %v2887_v50, %v2887_v50  ;;  %5110 = vtanh.f32 %v2646_v52  ;;  %v4512_v31 = vpop.f32.mrb[116].mxu1 }
 0x2b7   : > { %v5095_v33 = vpop.eup %5094  ;;  %v2661_v63 = vadd.f32 %v6244_v9, %v4512_v31  ;;  %v2655_v17 = vpop.f32.mrb[117].mxu1  ;;  %v2950_v2 = vmul.f32 %v2886_v23, %v2886_v23 }
 0x2b8   : > { %v5097_v60 = vpop.eup %5096  ;;  %v3106_v39 = vsel %vm2970_vm2, %v2951_v38, 0.0  ;;  %v6275_v6 = vsub.f32 %v5095_v33, %v6215_v10  ;;  %v2656_v25 = vadd.f32 %v6244_v9, %v2655_v17  ;;  %v2371_v10 = vadd.f32 %v6244_v9, %v6480_v1 }
 0x2b9   : > { %v5099_v12 = vpop.eup %5098  ;;  %3107 = vadd.xlane.f32.xlu1 %v3106_v39  ;;  %v6280_v55 = vsub.f32 %v5097_v60, %v6225_v51  ;;  %5112 = vtanh.f32 %v2661_v63  ;;  %v3103_v8 = vsel %vm2970_vm2, %v2950_v2, 0.0  ;;  %v6485_v63 = vld [vmem:[#allocation11_spill] sm:$0xff] }
 0x2ba   : > { %3098 = vadd.xlane.f32.xlu0 %v3097_v18  ;;  %5114 = vtanh.f32 %v2656_v25  ;;  %v4515_v40 = vpop.f32.mrb[118].mxu1  ;;  %v2386_v17 = vadd.f32 %v6244_v9, %v6485_v63 }
 0x2bb   : > { %v5101_v28 = vpop.eup %5100  ;;  %5116 = vtanh.f32 %v2361_v43  ;;  %v2671_v61 = vadd.f32 %v6244_v9, %v4515_v40  ;;  %v2665_v30 = vpop.f32.mrb[119].mxu1  ;;  %v6484_v43 = vld [vmem:[#allocation10_spill] sm:$0xff] }
 0x2bc   : > { %v5103_v7 = vpop.eup %5102  ;;  %v2891_v59 = vsub.f32 %v5101_v28, %v6235_v57  ;;  %5118 = vtanh.f32 %v2356_v37  ;;  %v2666_v51 = vadd.f32 %v6244_v9, %v2665_v30  ;;  %v2366_v57 = vadd.f32 %v6244_v9, %v6481_v13 }
 0x2bd   : > { %v5105_v48 = vpop.eup %5104  ;;  %v2890_v20 = vsub.f32 %v5103_v7, %v6239_v41  ;;  %5120 = vtanh.f32 %v2671_v61  ;;  %v2381_v41 = vadd.f32 %v6244_v9, %v6482_v53  ;;  %v2391_v31 = vadd.f32 %v6244_v9, %v6484_v43 }
 0x2be   : > { %v5107_v29 = vpop.eup %5106  ;;  %3104 = vadd.xlane.f32.xlu0 %v3103_v8  ;;  %v2955_v27 = vmul.f32 %v2891_v59, %v2891_v59  ;;  %5122 = vtanh.f32 %v2666_v51  ;;  %v4518_v44 = vpop.f32.mrb[120].mxu1 }
 0x2bf   : > { %v2954_v26 = vmul.f32 %v2890_v20, %v2890_v20  ;;  %v5109_v62 = vpop.eup %5108  ;;  %5124 = vtanh.f32 %v2371_v10  ;;  %v2681_v3 = vadd.f32 %v6244_v9, %v4518_v44  ;;  %v2675_v35 = vpop.f32.mrb[121].mxu1 }
 0x2c0   : > { %v3118_v5 = vsel %vm2970_vm2, %v2955_v27, 0.0  ;;  %v5111_v19 = vpop.eup %5110  ;;  %v2676_v14 = vadd.f32 %v6244_v9, %v2675_v35  ;;  %v2893_v58 = vsub.f32 %v5109_v62, %v6254_v21 }
 0x2c1   : > { %3119 = vadd.xlane.f32.xlu1 %v3118_v5  ;;  %v3115_v16 = vsel %vm2970_vm2, %v2954_v26, 0.0  ;;  %5126 = vtanh.f32 %v2681_v3  ;;  %v2892_v4 = vsub.f32 %v5111_v19, %v6261_v56 }
 0x2c2   : > { %3116 = vadd.xlane.f32.xlu0 %v3115_v16  ;;  %5128 = vtanh.f32 %v2676_v14  ;;  %v4521_v45 = vpop.f32.mrb[122].mxu1  ;;  %v2957_v0 = vmul.f32 %v2893_v58, %v2893_v58 }
 0x2c3   : > { %v5113_v22 = vpop.eup %5112  ;;  %5130 = vtanh.f32 %v2366_v57  ;;  %v2691_v49 = vadd.f32 %v6244_v9, %v4521_v45  ;;  %v2685_v32 = vpop.f32.mrb[123].mxu1  ;;  %v2956_v54 = vmul.f32 %v2892_v4, %v2892_v4  ;;  %v3164_v57 = vld [vmem:[%s6460_s1 + $0x8] sm:$0xff] }
 0x2c4   : > { %v5115_v15 = vpop.eup %5114  ;;  %5132 = vtanh.f32 %v2381_v41  ;;  %v2686_v21 = vadd.f32 %v6244_v9, %v2685_v32  ;;  %v3124_v50 = vsel %vm2970_vm2, %v2957_v0, 0.0  ;;  %v2895_v56 = vsub.f32 %v5113_v22, %v6266_v34  ;;  %3259 = vmatprep.mubr.f32.mxu0 %v3164_v57 }
 0x2c5   : > { %v5117_v52 = vpop.eup %5116  ;;  %5134 = vtanh.f32 %v2691_v49  ;;  %3125 = vadd.xlane.f32.xlu1 %v3124_v50  ;;  %v3121_v46 = vsel %vm2970_vm2, %v2956_v54, 0.0  ;;  %v2894_v36 = vsub.f32 %v5115_v15, %v5099_v12 }
 0x2c6   : > { %v5119_v23 = vpop.eup %5118  ;;  %5136 = vtanh.f32 %v2686_v21  ;;  %v4524_v38 = vpop.f32.mrb[124].mxu1  ;;  %3122 = vadd.xlane.f32.xlu0 %v3121_v46  ;;  %v2959_v33 = vmul.f32 %v2895_v56, %v2895_v56 }
 0x2c7   : > { %v5121_v11 = vpop.eup %5120  ;;  %5138 = vtanh.f32 %v2376_v42  ;;  %v2701_v60 = vadd.f32 %v6244_v9, %v4524_v38  ;;  %v2695_v47 = vpop.f32.mrb[125].mxu1  ;;  %v2958_v34 = vmul.f32 %v2894_v36, %v2894_v36  ;;  %v2953_v38 = vmul.f32 %v6275_v6, %v6275_v6  ;;  %v3170_v6 = vld [vmem:[%s6460_s1 + $0x38] sm:$0xff] }
 0x2c8   : > { %v5123_v37 = vpop.eup %5122  ;;  %v2696_v39 = vadd.f32 %v6244_v9, %v2695_v47  ;;  %v3130_v12 = vsel %vm2970_vm2, %v2959_v33, 0.0  ;;  %v2897_v25 = vsub.f32 %v5121_v11, %v5105_v48  ;;  %v2952_v11 = vmul.f32 %v6280_v55, %v6280_v55  ;;  %3369 = vmatprep.mubr.f32.mxu1 %v3170_v6  ;;  %v3179_v6 = vld [vmem:[%s6460_s1 + $0x80] sm:$0xff] }
 0x2c9   : > { %v5125_v18 = vpop.eup %5124  ;;  %5140 = vtanh.f32 %v2701_v60  ;;  %3131 = vadd.xlane.f32.xlu1 %v3130_v12  ;;  %v3127_v2 = vsel %vm2970_vm2, %v2958_v34, 0.0  ;;  %v2896_v28 = vsub.f32 %v5123_v37, %v5107_v29  ;;  %v3112_v43 = vsel %vm2970_vm2, %v2953_v38, 0.0 }
 0x2ca   : > { %5142 = vtanh.f32 %v2696_v39  ;;  %v4527_v40 = vpop.f32.mrb[126].mxu1  ;;  %3128 = vadd.xlane.f32.xlu0 %v3127_v2  ;;  %v2961_v7 = vmul.f32 %v2897_v25, %v2897_v25 }
 0x2cb   : > { %v5127_v1 = vpop.eup %5126  ;;  %5144 = vtanh.f32 %v2391_v31  ;;  %v2711_v10 = vadd.f32 %v6244_v9, %v4527_v40  ;;  %v2705_v61 = vpop.f32.mrb[127].mxu1  ;;  %v2960_v30 = vmul.f32 %v2896_v28, %v2896_v28  ;;  %v3109_v31 = vsel %vm2970_vm2, %v2952_v11, 0.0  ;;  %v3176_v11 = vld [vmem:[%s6460_s1 + $0x68] sm:$0xff] }
 0x2cc   : > { %v5129_v59 = vpop.eup %5128  ;;  %5146 = vtanh.f32 %v2386_v17  ;;  %v2706_v48 = vadd.f32 %v6244_v9, %v2705_v61  ;;  %v3136_v51 = vsel %vm2970_vm2, %v2961_v7, 0.0  ;;  %v2899_v8 = vsub.f32 %v5127_v1, %v5117_v52 }
 0x2cd   : > { %v5131_v20 = vpop.eup %5130  ;;  %5148 = vtanh.f32 %v2711_v10  ;;  %3137 = vadd.xlane.f32.xlu1 %v3136_v51  ;;  %v3133_v29 = vsel %vm2970_vm2, %v2960_v30, 0.0  ;;  %v2898_v27 = vsub.f32 %v5129_v59, %v5119_v23 }
 0x2ce   : > { %v5133_v44 = vpop.eup %5132  ;;  %5150 = vtanh.f32 %v2706_v48  ;;  %3134 = vadd.xlane.f32.xlu0 %v3133_v29  ;;  %v2963_v26 = vmul.f32 %v2899_v8, %v2899_v8 }
 0x2cf   : > { %v5135_v62 = vpop.eup %5134  ;;  %v2962_v13 = vmul.f32 %v2898_v27, %v2898_v27 }
 0x2d0   : > { %v5137_v9 = vpop.eup %5136  ;;  %v3142_v3 = vsel %vm2970_vm2, %v2963_v26, 0.0  ;;  %v2901_v35 = vsub.f32 %v5135_v62, %v5125_v18 }
 0x2d1   : > { %v5139_v5 = vpop.eup %5138  ;;  %3143 = vadd.xlane.f32.xlu1 %v3142_v3  ;;  %v3139_v19 = vsel %vm2970_vm2, %v2962_v13, 0.0  ;;  %v2900_v53 = vsub.f32 %v5137_v9, %v5131_v20 }
 0x2d2   : > { %3140 = vadd.xlane.f32.xlu0 %v3139_v19  ;;  %v2965_v41 = vmul.f32 %v2901_v35, %v2901_v35 }
 0x2d3   : > { %v5141_v14 = vpop.eup %5140  ;;  %v2964_v16 = vmul.f32 %v2900_v53, %v2900_v53 }
 0x2d4   : > { %v5143_v58 = vpop.eup %5142  ;;  %v3148_v4 = vsel %vm2970_vm2, %v2965_v41, 0.0  ;;  %v2903_v45 = vsub.f32 %v5141_v14, %v5133_v44 }
 0x2d5   : > { %v5145_v0 = vpop.eup %5144  ;;  %3149 = vadd.xlane.f32.xlu1 %v3148_v4  ;;  %v3145_v22 = vsel %vm2970_vm2, %v2964_v16, 0.0  ;;  %v2902_v24 = vsub.f32 %v5143_v58, %v5139_v5 }
 0x2d6   : > { %v5147_v42 = vpop.eup %5146  ;;  %3146 = vadd.xlane.f32.xlu0 %v3145_v22  ;;  %v2967_v49 = vmul.f32 %v2903_v45, %v2903_v45 }
 0x2d7   : > { %v5149_v32 = vpop.eup %5148  ;;  %v2966_v54 = vmul.f32 %v2902_v24, %v2902_v24 }
 0x2d8   : > { %v5151_v15 = vpop.eup %5150  ;;  %v3154_v21 = vsel %vm2970_vm2, %v2967_v49, 0.0  ;;  %v2905_v50 = vsub.f32 %v5149_v32, %v5145_v0 }
 0x2d9   : > { %3155 = vadd.xlane.f32.xlu1 %v3154_v21  ;;  %v3151_v56 = vsel %vm2970_vm2, %v2966_v54, 0.0  ;;  %v2904_v52 = vsub.f32 %v5151_v15, %v5147_v42  ;;  %v3163_v21 = vld [vmem:[%s6460_s1] sm:$0xff] }
 0x2da   : > { %3152 = vadd.xlane.f32.xlu0 %v3151_v56  ;;  %v2969_v46 = vmul.f32 %v2905_v50, %v2905_v50  ;;  %v3168_v50 = vld [vmem:[%s6460_s1 + $0x28] sm:$0xff] }
 0x2db   : > { %v2968_v36 = vmul.f32 %v2904_v52, %v2904_v52 }
 0x2dc   : > { %v3160_v23 = vsel %vm2970_vm2, %v2969_v46, 0.0  ;;  %v3167_v46 = vld [vmem:[%s6460_s1 + $0x20] sm:$0xff] }
 0x2dd   : > { %3161 = vadd.xlane.f32.xlu1 %v3160_v23  ;;  %v3157_v33 = vsel %vm2970_vm2, %v2968_v36, 0.0  ;;  %v3172_v36 = vld [vmem:[%s6460_s1 + $0x48] sm:$0xff] }
 0x2de   : > { %3158 = vadd.xlane.f32.xlu0 %v3157_v33  ;;  %v3171_v33 = vld [vmem:[%s6460_s1 + $0x40] sm:$0xff] }
 0x2e1   : > { %3113 = vadd.xlane.f32.xlu1 %v3112_v43 }
 0x2e2   : > { %3110 = vadd.xlane.f32.xlu0 %v3109_v31 }
 0x2ee   : > { %v2976_v60 = vpop.xlane.xlu1 %2975 }
 0x2f2   : > { %v2973_v47 = vpop.xlane.xlu1 %2972 }
 0x2f3   : > { %v2979_v34 = vpop.xlane.xlu0 %2978  ;;  %v4554_v48 = vpack.c.bf16 %v2976_v60, %v2973_v47  ;;  %v3175_v60 = vld [vmem:[%s6460_s1 + $0x60] sm:$0xff]  ;;  %v3180_v47 = vld [vmem:[%s6460_s1 + $0x88] sm:$0xff] }
 0x2f6   : > { %v2982_v37 = vpop.xlane.xlu1 %2981 }
 0x2f7   : > { %v2985_v63 = vpop.xlane.xlu0 %2984  ;;  %v4558_v29 = vpack.c.bf16 %v2982_v37, %v2979_v34 }
 0x2fa   : > { %v2988_v17 = vpop.xlane.xlu1 %2987 }
 0x2fb   : > { %v2991_v39 = vpop.xlane.xlu0 %2990  ;;  %v4562_v62 = vpack.c.bf16 %v2988_v17, %v2985_v63  ;;  %v3184_v63 = vld [vmem:[%s6460_s1 + $0xa8] sm:$0xff] }
 0x2fe   : > { %v2994_v55 = vpop.xlane.xlu1 %2993 }
 0x2ff   : > { %v2997_v12 = vpop.xlane.xlu0 %2996  ;;  %v4566_v3 = vpack.c.bf16 %v2994_v55, %v2991_v39  ;;  %v3183_v39 = vld [vmem:[%s6460_s1 + $0xa0] sm:$0xff]  ;;  %v3188_v55 = vld [vmem:[%s6460_s1 + $0xc8] sm:$0xff] }
 0x302   : > { %v3000_v25 = vpop.xlane.xlu1 %2999 }
 0x303   : > { %v3003_v18 = vpop.xlane.xlu0 %3002  ;;  %v4570_v53 = vpack.c.bf16 %v3000_v25, %v2997_v12 }
 0x306   : > { %v3006_v2 = vpop.xlane.xlu1 %3005 }
 0x307   : > { %v3009_v28 = vpop.xlane.xlu0 %3008  ;;  %v4574_v58 = vpack.c.bf16 %v3006_v2, %v3003_v18  ;;  %v3187_v18 = vld [vmem:[%s6460_s1 + $0xc0] sm:$0xff]  ;;  %v3192_v2 = vld [vmem:[%s6460_s1 + $0xe8] sm:$0xff] }
 0x30a   : > { %v3012_v40 = vpop.xlane.xlu1 %3011 }
 0x30b   : > { %v3015_v7 = vpop.xlane.xlu0 %3014  ;;  %v4578_v22 = vpack.c.bf16 %v3012_v40, %v3009_v28 }
 0x30e   : > { %v3018_v1 = vpop.xlane.xlu1 %3017 }
 0x30f   : > { %v3024_v10 = vpop.xlane.xlu0 %3023  ;;  %v4582_v32 = vpack.c.bf16 %v3018_v1, %v3015_v7 }
 0x312   : > { %v3030_v61 = vpop.xlane.xlu1 %3029 }
 0x313   : > { %v3021_v30 = vpop.xlane.xlu0 %3020 }
 0x314   : > { %v4552_v59 = vpack.c.bf16 %v3024_v10, %v3021_v30  ;;  %v3191_v10 = vld [vmem:[%s6460_s1 + $0xe0] sm:$0xff] }
 0x316   : > { %4553 = vmatprep.subr.bf16.mxu0 %v4552_v59  ;;  %v3036_v51 = vpop.xlane.xlu1 %3035 }
 0x317   : > { %v3027_v8 = vpop.xlane.xlu0 %3026  ;;  %4555 = vmatpush3.bf16.msra.mxu0 %v4554_v48 }
 0x318   : > { %v4556_v20 = vpack.c.bf16 %v3030_v61, %v3027_v8  ;;  %v3166_v61 = vld [vmem:[%s6460_s1 + $0x18] sm:$0xff] }
 0x31a   : > { %4557 = vmatprep.subr.bf16.mxu0 %v4556_v20  ;;  %v3042_v27 = vpop.xlane.xlu1 %3041 }
 0x31b   : > { %v3033_v44 = vpop.xlane.xlu0 %3032  ;;  %4559 = vmatpush3.bf16.msra.mxu0 %v4558_v29 }
 0x31c   : > { %v4560_v26 = vpack.c.bf16 %v3036_v51, %v3033_v44 }
 0x31e   : > { %4561 = vmatprep.subr.bf16.mxu0 %v4560_v26  ;;  %v3048_v13 = vpop.xlane.xlu1 %3047 }
 0x31f   : > { %v3039_v57 = vpop.xlane.xlu0 %3038  ;;  %4563 = vmatpush3.bf16.msra.mxu0 %v4562_v62 }
 0x320   : > { %v4564_v9 = vpack.c.bf16 %v3042_v27, %v3039_v57 }
 0x322   : > { %4565 = vmatprep.subr.bf16.mxu0 %v4564_v9  ;;  %v3054_v35 = vpop.xlane.xlu1 %3053 }
 0x323   : > { %v3045_v5 = vpop.xlane.xlu0 %3044  ;;  %4567 = vmatpush3.bf16.msra.mxu0 %v4566_v3 }
 0x324   : > { %v4568_v19 = vpack.c.bf16 %v3048_v13, %v3045_v5 }
 0x326   : > { %4569 = vmatprep.subr.bf16.mxu0 %v4568_v19  ;;  %v3060_v41 = vpop.xlane.xlu1 %3059 }
 0x327   : > { %v3051_v14 = vpop.xlane.xlu0 %3050  ;;  %4571 = vmatpush3.bf16.msra.mxu0 %v4570_v53 }
 0x328   : > { %v4572_v16 = vpack.c.bf16 %v3054_v35, %v3051_v14 }
 0x32a   : > { %4573 = vmatprep.subr.bf16.mxu0 %v4572_v16  ;;  %v3066_v4 = vpop.xlane.xlu1 %3065 }
 0x32b   : > { %v3057_v45 = vpop.xlane.xlu0 %3056  ;;  %4575 = vmatpush3.bf16.msra.mxu0 %v4574_v58 }
 0x32c   : > { %v4576_v0 = vpack.c.bf16 %v3060_v41, %v3057_v45 }
 0x32e   : > { %4577 = vmatprep.subr.bf16.mxu0 %v4576_v0  ;;  %v3072_v24 = vpop.xlane.xlu1 %3071 }
 0x32f   : > { %v3063_v42 = vpop.xlane.xlu0 %3062  ;;  %4579 = vmatpush3.bf16.msra.mxu0 %v4578_v22 }
 0x330   : > { %v4580_v49 = vpack.c.bf16 %v3066_v4, %v3063_v42 }
 0x332   : > { %4581 = vmatprep.subr.bf16.mxu0 %v4580_v49  ;;  %v3078_v54 = vpop.xlane.xlu1 %3077 }
 0x333   : > { %v3069_v15 = vpop.xlane.xlu0 %3068  ;;  %4583 = vmatpush3.bf16.msra.mxu0 %v4582_v32  ;;  %v3165_v32 = vld [vmem:[%s6460_s1 + $0x10] sm:$0xff] }
 0x334   : > { %v4586_v1 = vpack.c.bf16 %v3072_v24, %v3069_v15  ;;  %v3174_v15 = vld [vmem:[%s6460_s1 + $0x58] sm:$0xff] }
 0x336   : > { %v3084_v56 = vpop.xlane.xlu1 %3083  ;;  %3260 = vmatmul.mubr.f32.vlgmr.msra.gmra.mrb[128].mxu0 %v3163_v21  ;;  %v3173_v21 = vld [vmem:[%s6460_s1 + $0x50] sm:$0xff] }
 0x337   : > { %v3075_v52 = vpop.xlane.xlu0 %3074  ;;  %3264 = vmatprep.mubr.f32.mxu0 %v3168_v50  ;;  %v3178_v50 = vld [vmem:[%s6460_s1 + $0x78] sm:$0xff] }
 0x338   : > { %v4590_v51 = vpack.c.bf16 %v3078_v54, %v3075_v52  ;;  %v3169_v54 = vld [vmem:[%s6460_s1 + $0x30] sm:$0xff]  ;;  %v3182_v52 = vld [vmem:[%s6460_s1 + $0x98] sm:$0xff] }
 0x33a   : > { %v3090_v23 = vpop.xlane.xlu1 %3089  ;;  %3265 = vmatmul.mubr.f32.gmra.mrb[130].mxu0 %v3167_v46  ;;  %v3181_v46 = vld [vmem:[%s6460_s1 + $0x90] sm:$0xff] }
 0x33b   : > { %v3081_v38 = vpop.xlane.xlu0 %3080  ;;  %3269 = vmatprep.mubr.f32.mxu0 %v3172_v36  ;;  %v3186_v36 = vld [vmem:[%s6460_s1 + $0xb8] sm:$0xff] }
 0x33c   : > { %v4594_v27 = vpack.c.bf16 %v3084_v56, %v3081_v38  ;;  %v3177_v56 = vld [vmem:[%s6460_s1 + $0x70] sm:$0xff]  ;;  %v3190_v38 = vld [vmem:[%s6460_s1 + $0xd8] sm:$0xff] }
 0x33e   : > { %v6356_v43 = vpop.xlane.xlu1 %3095  ;;  %3270 = vmatmul.mubr.f32.gmra.mrb[132].mxu0 %v3171_v33  ;;  %v3189_v33 = vld [vmem:[%s6460_s1 + $0xd0] sm:$0xff] }
 0x33f   : > { %v3087_v31 = vpop.xlane.xlu0 %3086  ;;  %3274 = vmatprep.mubr.f32.mxu0 %v3176_v11  ;;  %v3194_v11 = vld [vmem:[%s6460_s1 + $0xf8] sm:$0xff] }
 0x340   : > { %v4598_v13 = vpack.c.bf16 %v3090_v23, %v3087_v31  ;;  %v3185_v23 = vld [vmem:[%s6460_s1 + $0xb0] sm:$0xff] }
 0x342   : > { %3275 = vmatmul.mubr.f32.gmra.mrb[134].mxu0 %v3175_v60  ;;  %v3102_v37 = vpop.xlane.xlu1 %3101 }
 0x343   : > { %v3093_v34 = vpop.xlane.xlu0 %3092  ;;  %3279 = vmatprep.mubr.f32.mxu0 %v3180_v47 }
 0x344   : > { %v4602_v35 = vpack.c.bf16 %v6356_v43, %v3093_v34  ;;  %v3193_v43 = vld [vmem:[%s6460_s1 + $0xf0] sm:$0xff] }
 0x346   : > { %3280 = vmatmul.mubr.f32.gmra.mrb[136].mxu0 %v3179_v6  ;;  %v6376_v12 = vpop.xlane.xlu1 %3107 }
 0x347   : > { %v3099_v17 = vpop.xlane.xlu0 %3098  ;;  %3284 = vmatprep.mubr.f32.mxu0 %v3184_v63 }
 0x348   : > { %v4606_v41 = vpack.c.bf16 %v3102_v37, %v3099_v17 }
 0x34a   : > { %3285 = vmatmul.mubr.f32.gmra.mrb[138].mxu0 %v3183_v39 }
 0x34b   : > { %v3105_v25 = vpop.xlane.xlu0 %3104  ;;  %3289 = vmatprep.mubr.f32.mxu0 %v3188_v55 }
 0x34c   : > { %v4610_v4 = vpack.c.bf16 %v6376_v12, %v3105_v25 }
 0x34e   : > { %v3120_v28 = vpop.xlane.xlu1 %3119  ;;  %3290 = vmatmul.mubr.f32.gmra.mrb[140].mxu0 %v3187_v18 }
 0x34f   : > { %v3117_v40 = vpop.xlane.xlu0 %3116  ;;  %3294 = vmatprep.mubr.f32.mxu0 %v3192_v2 }
 0x350   : > { %v4584_v7 = vpack.c.bf16 %v3120_v28, %v3117_v40 }
 0x352   : > { %4585 = vmatprep.subr.bf16.mxu0 %v4584_v7  ;;  %4616 = vmatprep.subr.bf16.mxu1 %v4584_v7  ;;  %v3126_v30 = vpop.xlane.xlu1 %3125 }
 0x353   : > { %4587 = vmatpush3.bf16.msra.mxu0 %v4586_v1  ;;  %4624 = vmatpush3.bf16.msra.mxu1 %v4586_v1  ;;  %v3123_v59 = vpop.xlane.xlu0 %3122 }
 0x354   : > { %3295 = vmatmul.mubr.f32.gmra.mrb[142].mxu0 %v3191_v10  ;;  %v4588_v48 = vpack.c.bf16 %v3126_v30, %v3123_v59 }
 0x355   : > { %3364 = vmatprep.mubr.f32.mxu0 %v3166_v61 }
 0x356   : > { %4589 = vmatprep.subr.bf16.mxu0 %v4588_v48  ;;  %4617 = vmatprep.subr.bf16.mxu1 %v4588_v48  ;;  %v3132_v8 = vpop.xlane.xlu1 %3131 }
 0x357   : > { %v3129_v20 = vpop.xlane.xlu0 %3128  ;;  %4591 = vmatpush3.bf16.msra.mxu0 %v4590_v51  ;;  %4625 = vmatpush3.bf16.msra.mxu1 %v4590_v51 }
 0x358   : > { %v4592_v29 = vpack.c.bf16 %v3132_v8, %v3129_v20 }
 0x35a   : > { %4593 = vmatprep.subr.bf16.mxu0 %v4592_v29  ;;  %4618 = vmatprep.subr.bf16.mxu1 %v4592_v29  ;;  %v3138_v44 = vpop.xlane.xlu1 %3137 }
 0x35b   : > { %v3135_v26 = vpop.xlane.xlu0 %3134  ;;  %4595 = vmatpush3.bf16.msra.mxu0 %v4594_v27  ;;  %4626 = vmatpush3.bf16.msra.mxu1 %v4594_v27 }
 0x35c   : > { %v4596_v62 = vpack.c.bf16 %v3138_v44, %v3135_v26 }
 0x35e   : > { %4597 = vmatprep.subr.bf16.mxu0 %v4596_v62  ;;  %4619 = vmatprep.subr.bf16.mxu1 %v4596_v62  ;;  %v3144_v57 = vpop.xlane.xlu1 %3143 }
 0x35f   : > { %v3141_v9 = vpop.xlane.xlu0 %3140  ;;  %4599 = vmatpush3.bf16.msra.mxu0 %v4598_v13  ;;  %4627 = vmatpush3.bf16.msra.mxu1 %v4598_v13 }
 0x360   : > { %v4600_v3 = vpack.c.bf16 %v3144_v57, %v3141_v9 }
 0x362   : > { %4601 = vmatprep.subr.bf16.mxu0 %v4600_v3  ;;  %4620 = vmatprep.subr.bf16.mxu1 %v4600_v3  ;;  %v3150_v5 = vpop.xlane.xlu1 %3149 }
 0x363   : > { %v3147_v19 = vpop.xlane.xlu0 %3146  ;;  %4603 = vmatpush3.bf16.msra.mxu0 %v4602_v35  ;;  %4628 = vmatpush3.bf16.msra.mxu1 %v4602_v35 }
 0x364   : > { %v4604_v53 = vpack.c.bf16 %v3150_v5, %v3147_v19 }
 0x366   : > { %4605 = vmatprep.subr.bf16.mxu0 %v4604_v53  ;;  %4621 = vmatprep.subr.bf16.mxu1 %v4604_v53  ;;  %v3156_v14 = vpop.xlane.xlu1 %3155 }
 0x367   : > { %v3153_v16 = vpop.xlane.xlu0 %3152  ;;  %4607 = vmatpush3.bf16.msra.mxu0 %v4606_v41  ;;  %4629 = vmatpush3.bf16.msra.mxu1 %v4606_v41 }
 0x368   : > { %v4608_v58 = vpack.c.bf16 %v3156_v14, %v3153_v16 }
 0x36a   : > { %4609 = vmatprep.subr.bf16.mxu0 %v4608_v58  ;;  %4622 = vmatprep.subr.bf16.mxu1 %v4608_v58  ;;  %v3162_v45 = vpop.xlane.xlu1 %3161 }
 0x36b   : > { %v3159_v0 = vpop.xlane.xlu0 %3158  ;;  %4611 = vmatpush3.bf16.msra.mxu0 %v4610_v4  ;;  %4630 = vmatpush3.bf16.msra.mxu1 %v4610_v4 }
 0x36c   : > { %v4612_v22 = vpack.c.bf16 %v3162_v45, %v3159_v0 }
 0x36e   : > { %4613 = vmatprep.subr.bf16.mxu0 %v4612_v22  ;;  %4623 = vmatprep.subr.bf16.mxu1 %v4612_v22  ;;  %v3114_v24 = vpop.xlane.xlu1 %3113 }
 0x36f   : > { %v3111_v42 = vpop.xlane.xlu0 %3110 }
 0x370   : > { %v4614_v49 = vpack.c.bf16 %v3114_v24, %v3111_v42 }
 0x372   : > { %4615 = vmatpush3.bf16.msra.mxu0 %v4614_v49  ;;  %4631 = vmatpush3.bf16.msra.mxu1 %v4614_v49 }
 0x375   : > { %3365 = vmatmul.mubr.f32.vlgmr.msra.gmra.mrb[144].mxu0 %v3165_v32  ;;  %3370 = vmatmul.mubr.f32.vlgmr.msra.gmra.mrb[128].mxu1 %v3169_v54 }
 0x376   : > { %3374 = vmatprep.mubr.f32.mxu1 %v3174_v15 }
 0x379   : > { %3375 = vmatmul.mubr.f32.gmra.mrb[130].mxu1 %v3173_v21 }
 0x37a   : > { %3379 = vmatprep.mubr.f32.mxu1 %v3178_v50 }
 0x37d   : > { %3380 = vmatmul.mubr.f32.gmra.mrb[132].mxu1 %v3177_v56 }
 0x37e   : > { %3384 = vmatprep.mubr.f32.mxu1 %v3182_v52 }
 0x381   : > { %3385 = vmatmul.mubr.f32.gmra.mrb[134].mxu1 %v3181_v46 }
 0x382   : > { %3389 = vmatprep.mubr.f32.mxu1 %v3186_v36 }
 0x385   : > { %3390 = vmatmul.mubr.f32.gmra.mrb[136].mxu1 %v3185_v23 }
 0x386   : > { %3394 = vmatprep.mubr.f32.mxu1 %v3190_v38 }
 0x389   : > { %3395 = vmatmul.mubr.f32.gmra.mrb[138].mxu1 %v3189_v33 }
 0x38a   : > { %3399 = vmatprep.mubr.f32.mxu1 %v3194_v11 }
 0x38d   : > { %3400 = vmatmul.mubr.f32.gmra.mrb[140].mxu1 %v3193_v43 }
 0x409   : > { %v4040_v31 = vpop.f32.mrb[128].mxu0 }
 0x40a   : > { %v4041_v60 = vpop.f32.mrb[129].mxu0 }
 0x40b   : > { %v4042_v47 = vadd.f32 %v4041_v60, %v4040_v31 }
 0x40d   : > { %v4043_v34 = vpop.f32.mrb[130].mxu0 }
 0x40e   : > { %v4044_v6 = vpop.f32.mrb[131].mxu0 }
 0x40f   : > { %v4045_v37 = vadd.f32 %v4044_v6, %v4043_v34 }
 0x411   : > { %v4046_v63 = vpop.f32.mrb[132].mxu0 }
 0x412   : > { %v4047_v17 = vpop.f32.mrb[133].mxu0 }
 0x413   : > { %v4048_v39 = vadd.f32 %v4047_v17, %v4046_v63 }
 0x415   : > { %v4049_v55 = vpop.f32.mrb[134].mxu0 }
 0x416   : > { %v4050_v12 = vpop.f32.mrb[135].mxu0 }
 0x417   : > { %v4051_v25 = vadd.f32 %v4050_v12, %v4049_v55 }
 0x419   : > { %v4052_v18 = vpop.f32.mrb[136].mxu0 }
 0x41a   : > { %v4053_v2 = vpop.f32.mrb[137].mxu0 }
 0x41b   : > { %v4054_v28 = vadd.f32 %v4053_v2, %v4052_v18 }
 0x41d   : > { %v4055_v40 = vpop.f32.mrb[138].mxu0 }
 0x41e   : > { %v4056_v7 = vpop.f32.mrb[139].mxu0 }
 0x41f   : > { %v4057_v1 = vadd.f32 %v4056_v7, %v4055_v40 }
 0x421   : > { %v4058_v10 = vpop.f32.mrb[140].mxu0 }
 0x422   : > { %v4059_v61 = vpop.f32.mrb[141].mxu0 }
 0x423   : > { %v4060_v30 = vadd.f32 %v4059_v61, %v4058_v10 }
 0x427   : > { %v4061_v59 = vpop.f32.mrb[142].mxu0 }
 0x428   : > { %v4062_v48 = vpop.f32.mrb[143].mxu0 }
 0x429   : > { %v4063_v51 = vadd.f32 %v4062_v48, %v4061_v59 }
 0x448   : > { %v4096_v8 = vpop.f32.mrb[144].mxu0  ;;  %v4099_v20 = vpop.f32.mrb[128].mxu1 }
 0x449   : > { %v4097_v29 = vpop.f32.mrb[145].mxu0  ;;  %v4100_v27 = vpop.f32.mrb[129].mxu1 }
 0x44a   : > { %v4098_v44 = vadd.f32 %v4097_v29, %v4096_v8  ;;  %v4101_v26 = vadd.f32 %v4100_v27, %v4099_v20 }
 0x44c   : > { %v3367_v62 = vadd.f32 %v4098_v44, %v4042_v47  ;;  %v3372_v13 = vadd.f32 %v4101_v26, %v4045_v37  ;;  %v4102_v57 = vpop.f32.mrb[130].mxu1 }
 0x44d   : > { %v4103_v9 = vpop.f32.mrb[131].mxu1 }
 0x44e   : > { %3406 = vst.msk [vmem:[%s6438_s14] sm:$0xff] %vm3405_vm3, %v3367_v62  ;;  %3407 = vst.msk [vmem:[%s6438_s14 + $0x8] sm:$0xff] %vm3405_vm3, %v3372_v13  ;;  %v4104_v3 = vadd.f32 %v4103_v9, %v4102_v57 }
 0x450   : > { %v3377_v35 = vadd.f32 %v4104_v3, %v4048_v39  ;;  %v4105_v5 = vpop.f32.mrb[132].mxu1 }
 0x451   : > { %v4106_v19 = vpop.f32.mrb[133].mxu1 }
 0x452   : > { %3408 = vst.msk [vmem:[%s6438_s14 + $0x10] sm:$0xff] %vm3405_vm3, %v3377_v35  ;;  %v4107_v53 = vadd.f32 %v4106_v19, %v4105_v5 }
 0x454   : > { %v3382_v41 = vadd.f32 %v4107_v53, %v4051_v25  ;;  %v4108_v14 = vpop.f32.mrb[134].mxu1 }
 0x455   : > { %v4109_v16 = vpop.f32.mrb[135].mxu1 }
 0x456   : > { %3409 = vst.msk [vmem:[%s6438_s14 + $0x18] sm:$0xff] %vm3405_vm3, %v3382_v41  ;;  %v4110_v58 = vadd.f32 %v4109_v16, %v4108_v14 }
 0x458   : > { %v3387_v4 = vadd.f32 %v4110_v58, %v4054_v28  ;;  %v4111_v45 = vpop.f32.mrb[136].mxu1 }
 0x459   : > { %v4112_v0 = vpop.f32.mrb[137].mxu1 }
 0x45a   : > { %3410 = vst.msk [vmem:[%s6438_s14 + $0x20] sm:$0xff] %vm3405_vm3, %v3387_v4  ;;  %v4113_v22 = vadd.f32 %v4112_v0, %v4111_v45 }
 0x45c   : > { %v3392_v24 = vadd.f32 %v4113_v22, %v4057_v1  ;;  %v4114_v42 = vpop.f32.mrb[138].mxu1 }
 0x45d   : > { %v4115_v49 = vpop.f32.mrb[139].mxu1 }
 0x45e   : > { %3411 = vst.msk [vmem:[%s6438_s14 + $0x28] sm:$0xff] %vm3405_vm3, %v3392_v24  ;;  %v4116_v32 = vadd.f32 %v4115_v49, %v4114_v42 }
 0x460   : > { %v3397_v54 = vadd.f32 %v4116_v32, %v4060_v30  ;;  %v4117_v15 = vpop.f32.mrb[140].mxu1 }
 0x461   : > { %v4118_v21 = vpop.f32.mrb[141].mxu1 }
 0x462   : > { %3412 = vst.msk [vmem:[%s6438_s14 + $0x30] sm:$0xff] %vm3405_vm3, %v3397_v54  ;;  %v4119_v50 = vadd.f32 %v4118_v21, %v4117_v15 }
 0x464   : > { %v3402_v56 = vadd.f32 %v4119_v50, %v4063_v51 }
 0x466   : > { %3413 = vst.msk [vmem:[%s6438_s14 + $0x38] sm:$0xff] %vm3405_vm3, %v3402_v56 }
 0x467 PF: > { %s16_s21 = sadd.s32 1, %s5160_s21  }
 0x468   : > { %p13_p4 = scmp.ge.s32.totalorder %s16_s21, 6  }
 0x46a   :  { %15 = sbr.rel (!%p13_p4) target bundleno = 1 (0x1), region = 74 }

</bundles_post_ra>
